<compile_context>
chip_gen: v5e
topology: v5e:2x2
jax: 0.10.0
libtpu: 0.0.40
codegen_flags: <defaults>
</compile_context>

<pallas_src>
import functools
import math

import jax
import jax.numpy as jnp
from jax.experimental import pallas as pl
from jax.experimental.pallas import tpu as pltpu


# ----------------------------- in-kernel helpers -----------------------------

def _ln(x, g, b, eps=1e-12):
    # TODO(synk): eps=1e-12 matches HF ViTConfig.layer_norm_eps (torch nn.LayerNorm default is 1e-5).
    mu = jnp.mean(x, axis=-1, keepdims=True)
    var = jnp.mean((x - mu) ** 2, axis=-1, keepdims=True)
    return (x - mu) * jax.lax.rsqrt(var + eps) * g + b


def _pick_batch_tile(B, S_pad, target_rows=128):
    # Largest batch tile (divisor of B) keeping Bt*S_pad around the target M rows.
    bt = 1
    for cand in range(1, B + 1):
        if B % cand == 0 and cand * S_pad <= max(target_rows, S_pad):
            bt = cand
    return bt


# --------------------- fully fused ViT + projection kernel ---------------------

def _vit_fused_kernel(num_heads,
                      patch_ref, base_ref, pw_ref, abias_ref, poolw_ref,
                      vec_ref, b1_ref,
                      wq_ref, wk_ref, wv_ref, wo_ref, w1_ref, w2_ref,
                      lnf_g, lnf_b, fc_w, fc_b, m_w1, m_b1, m_w2, m_b2,
                      o_ref, tok_ref):
    l = pl.program_id(1)
    n_layers = pl.num_programs(1)
    bt, sp, d = tok_ref.shape
    m = bt * sp
    hd = d // num_heads
    scale = 1.0 / math.sqrt(hd)

    # ---- first grid step of each batch tile: patch embedding + CLS/pos into VMEM ----
    @pl.when(l == 0)
    def _():
        xp = patch_ref[...].reshape(m, -1)                     # bf16 pixels; CLS/pad rows are zero
        emb = jnp.dot(xp, pw_ref[...], preferred_element_type=jnp.float32)
        # base = pos + CLS (row 0) + patch-conv bias (patch rows), folded on the host.
        tok_ref[...] = emb.reshape(bt, sp, d) + base_ref[...]

    x = tok_ref[...].reshape(m, d)                             # fp32 resident hidden state
    vec = vec_ref[0]                                           # (16, D) packed LN gains/biases + biases
    ln1_g, ln1_b = vec[0:1], vec[1:2]
    ln2_g, ln2_b = vec[2:3], vec[3:4]
    bq, bk, bv = vec[4:5], vec[5:6], vec[6:7]
    bo, b2 = vec[7:8], vec[8:9]

    # --- MHSA block (pre-LN), matmuls in bf16, math in fp32 ---
    h = _ln(x, ln1_g, ln1_b).astype(jnp.bfloat16)
    q = jnp.dot(h, wq_ref[0], preferred_element_type=jnp.float32) + bq
    k = jnp.dot(h, wk_ref[0], preferred_element_type=jnp.float32) + bk
    v = jnp.dot(h, wv_ref[0], preferred_element_type=jnp.float32) + bv

    def to_heads(t):
        if num_heads == 1:
            return t.reshape(bt, sp, d)
        # (Bt, S, H, hd) -> (Bt*H, S, hd); static branch, only taken for multi-head configs.
        t = t.reshape(bt, sp, num_heads, hd)
        return jnp.transpose(t, (0, 2, 1, 3)).reshape(bt * num_heads, sp, hd)

    q3, k3, v3 = to_heads(q), to_heads(k), to_heads(v)
    s = jnp.einsum("bqd,bkd->bqk",
                   q3.astype(jnp.bfloat16), k3.astype(jnp.bfloat16),
                   preferred_element_type=jnp.float32) * scale
    s = s + abias_ref[...].reshape(1, 1, sp)                   # 0 for valid keys, -1e30 for padded
    s = s - jnp.max(s, axis=-1, keepdims=True)
    p = jnp.exp(s)
    p = p * pl.reciprocal(jnp.sum(p, axis=-1, keepdims=True), approx=True)
    ctx = jnp.einsum("bqk,bkd->bqd",
                     p.astype(jnp.bfloat16), v3.astype(jnp.bfloat16),
                     preferred_element_type=jnp.float32)
    if num_heads == 1:
        ctx = ctx.reshape(m, d)
    else:
        ctx = jnp.transpose(ctx.reshape(bt, num_heads, sp, hd), (0, 2, 1, 3)).reshape(m, d)

    attn = jnp.dot(ctx.astype(jnp.bfloat16), wo_ref[0],
                   preferred_element_type=jnp.float32) + bo
    x = x + attn

    # --- MLP block (pre-LN) ---
    h2 = _ln(x, ln2_g, ln2_b).astype(jnp.bfloat16)
    ff = jnp.dot(h2, w1_ref[0], preferred_element_type=jnp.float32) + b1_ref[0]
    # TODO(synk): HF ViT uses exact erf-GELU; tanh approximation kept for guaranteed Mosaic lowering.
    ff = jax.nn.gelu(ff, approximate=True)
    ff = jnp.dot(ff.astype(jnp.bfloat16), w2_ref[0], preferred_element_type=jnp.float32) + b2
    x = x + ff

    tok_ref[...] = x.reshape(bt, sp, d)

    # ---- last grid step: final LN + fc/MLP projection + AP pool + l2norm ----
    @pl.when(l == n_layers - 1)
    def _():
        # ViT final LayerNorm -> last_hidden_state (== img[0] in the torch code)
        hh = _ln(x, lnf_g[...], lnf_b[...]).astype(jnp.bfloat16)
        # EncoderImage_ProjFeature: fc(img) + MLP(img)
        fc = jnp.dot(hh, fc_w[...], preferred_element_type=jnp.float32) + fc_b[...]
        mm = jnp.dot(hh, m_w1[...], preferred_element_type=jnp.float32) + m_b1[...]
        mm = jnp.maximum(mm, 0.0).astype(jnp.bfloat16)
        mm = jnp.dot(mm, m_w2[...], preferred_element_type=jnp.float32) + m_b2[...]
        emb = (fc + mm).reshape(bt, sp, -1)                    # (Bt, S_pad, E)
        # TODO(synk): `AP` pooling definition not provided; masked average pooling over the
        # (training-mode, all-valid) regions is used here (pool weights precomputed host-side).
        pooled = jnp.sum(emb * poolw_ref[...].reshape(1, sp, 1), axis=1)   # (Bt, E)
        inv = jax.lax.rsqrt(jnp.sum(pooled * pooled, axis=-1, keepdims=True) + 1e-16)
        o_ref[...] = (pooled * inv).astype(o_ref.dtype)        # l2norm along dim=-1, single store


def vit_encoder(patches, base, attn_bias, pool_w, params, *, num_heads, bt):
    B, Sp, K = patches.shape
    D = params["patch_w"].shape[1]
    lw = params["layers"]
    pp = params["proj"]
    L = lw["wq"].shape[0]
    F = lw["w1"].shape[2]
    E = pp["fc_w"].shape[1]
    nb = B // bt

    wmap = lambda b, l: (l, 0, 0)     # stream layer l's weights (double-buffered prefetch)
    bmap = lambda b, l: (b, 0, 0)     # per-batch-tile inputs, fetched once per tile
    c3 = lambda b, l: (0, 0, 0)       # constants, fetched exactly once
    c2 = lambda b, l: (0, 0)

    # TODO(synk): for production ViT sizes (D=768, mlp=3072) tile w1/w2 over the mlp dim
    # and re-budget vmem_limit_bytes for v7x's 64 MiB physical VMEM.
    return pl.pallas_call(
        functools.partial(_vit_fused_kernel, num_heads),
        out_shape=jax.ShapeDtypeStruct((B, E), jnp.float32),
        grid=(nb, L),
        in_specs=[
            pl.BlockSpec((bt, Sp, K), bmap),       # padded pixel patches (bf16)
            pl.BlockSpec((1, Sp, D), c3),          # cls + pos + patch-bias base
            pl.BlockSpec((K, D), c2),              # patch-embed weight
            pl.BlockSpec((1, Sp), c2),             # additive attention key mask
            pl.BlockSpec((Sp, 1), c2),             # masked-mean pool weights
            pl.BlockSpec((1, 16, D), wmap),        # packed LN/bias vectors
            pl.BlockSpec((1, 1, F), wmap),         # MLP hidden bias
            pl.BlockSpec((1, D, D), wmap),         # wq
            pl.BlockSpec((1, D, D), wmap),         # wk
            pl.BlockSpec((1, D, D), wmap),         # wv
            pl.BlockSpec((1, D, D), wmap),         # wo
            pl.BlockSpec((1, D, F), wmap),         # w1
            pl.BlockSpec((1, F, D), wmap),         # w2
            pl.BlockSpec((1, D), c2),              # final LN gain
            pl.BlockSpec((1, D), c2),              # final LN bias
            pl.BlockSpec((D, E), c2),              # fc weight
            pl.BlockSpec((1, E), c2),              # fc bias
            pl.BlockSpec((D, E // 2), c2),         # proj-MLP w1
            pl.BlockSpec((1, E // 2), c2),         # proj-MLP b1
            pl.BlockSpec((E // 2, E), c2),         # proj-MLP w2
            pl.BlockSpec((1, E), c2),              # proj-MLP b2
        ],
        out_specs=pl.BlockSpec((bt, E), lambda b, l: (b, 0)),
        scratch_shapes=[pltpu.VMEM((bt, Sp, D), jnp.float32)],  # VMEM-resident token slab
        compiler_params=pltpu.CompilerParams(
            dimension_semantics=("parallel", "arbitrary"),
            vmem_limit_bytes=48 * 1024 * 1024),
    )(patches, base, params["patch_w"], attn_bias, pool_w,
      lw["vec"], lw["b1"], lw["wq"], lw["wk"], lw["wv"], lw["wo"], lw["w1"], lw["w2"],
      pp["lnf_g"], pp["lnf_b"], pp["fc_w"], pp["fc_b"],
      pp["m_w1"], pp["m_b1"], pp["m_w2"], pp["m_b2"])


# ------------------------------- model wrapper --------------------------------

def init_params(key, *, C, patch, D, n_layers, mlp_dim, E, S_pad, S_valid):
    keys = iter(jax.random.split(key, 64))

    def nrm(shape, s=0.02, dtype=jnp.float32):
        return (s * jax.random.normal(next(keys), shape, jnp.float32)).astype(dtype)

    L, F = n_layers, mlp_dim
    # Packed per-layer vectors: rows 0 ln1_g, 1 ln1_b, 2 ln2_g, 3 ln2_b, 4 bq, 5 bk,
    # 6 bv, 7 bo, 8 b2; rows 9-15 zero padding (sublane aligned).
    vec = jnp.zeros((L, 16, D), jnp.float32)
    vec = vec.at[:, 0].set(1.0)
    vec = vec.at[:, 2].set(1.0)
    layers = {
        "vec": vec,
        "b1": jnp.zeros((L, 1, F), jnp.float32),
        "wq": nrm((L, D, D), dtype=jnp.bfloat16),
        "wk": nrm((L, D, D), dtype=jnp.bfloat16),
        "wv": nrm((L, D, D), dtype=jnp.bfloat16),
        "wo": nrm((L, D, D), dtype=jnp.bfloat16),
        "w1": nrm((L, D, F), dtype=jnp.bfloat16),
        "w2": nrm((L, F, D), dtype=jnp.bfloat16),
    }
    pos = jnp.zeros((1, S_pad, D), jnp.float32)
    pos = pos.at[:, :S_valid].set(nrm((1, S_valid, D)))
    params = {
        "patch_w": nrm((C * patch * patch, D), dtype=jnp.bfloat16),
        "patch_b": jnp.zeros((1, D), jnp.float32),
        "cls": nrm((1, 1, D)),
        "pos": pos,
        "layers": layers,
    }
    # EncoderImage_ProjFeature.init_weights: fc uniform(-r, r), bias 0
    r = math.sqrt(6.0) / math.sqrt(D + E)
    params["proj"] = {
        "lnf_g": jnp.ones((1, D), jnp.float32),
        "lnf_b": jnp.zeros((1, D), jnp.float32),
        "fc_w": jax.random.uniform(next(keys), (D, E), jnp.float32, -r, r).astype(jnp.bfloat16),
        "fc_b": jnp.zeros((1, E), jnp.float32),
        # TODO(synk): MLP class definition not provided; 2-layer Linear/ReLU/Linear
        # (BatchNorm with identity running stats omitted) is used.
        "m_w1": nrm((D, E // 2), dtype=jnp.bfloat16),
        "m_b1": jnp.zeros((1, E // 2), jnp.float32),
        "m_w2": nrm((E // 2, E), dtype=jnp.bfloat16),
        "m_b2": jnp.zeros((1, E), jnp.float32),
    }
    return params


def encoder_image_vit_forward(img_nchw, params, *, patch, num_heads):
    B, C, H, W = img_nchw.shape
    hp, wp = H // patch, W // patch
    P = hp * wp
    K = C * patch * patch
    S_pad = params["pos"].shape[1]
    S_valid = P + 1

    # glue: NCHW -> non-overlapping patches flattened in (c, ph, pw) order (matching
    # Conv2d(kernel=stride=patch) weight flattening), placed at token slots 1..P of a
    # sublane-padded (B, S_pad, K) slab. Slot 0 (CLS) and padded slots are zero-pixel rows.
    x = img_nchw.reshape(B, C, hp, patch, wp, patch)
    x = x.transpose(0, 2, 4, 1, 3, 5).reshape(B, P, K)
    patches = jnp.zeros((B, S_pad, K), jnp.bfloat16)
    patches = patches.at[:, 1:1 + P, :].set(x.astype(jnp.bfloat16))

    # token "base": position embeddings + CLS embedding (slot 0) + patch-conv bias (patch
    # slots) folded into one constant slab, so the kernel embed step is (pixels @ W) + base.
    base = params["pos"]
    base = base.at[:, 0].add(params["cls"][0, 0])
    base = base.at[:, 1:1 + P].add(params["patch_b"])

    # constant masks: additive attention bias over padded key slots, masked-mean pool weights.
    col = jnp.arange(S_pad)
    attn_bias = jnp.where(col < S_valid, 0.0, -1e30).astype(jnp.float32).reshape(1, S_pad)
    pool_w = jnp.where(col < S_valid, 1.0 / S_valid, 0.0).astype(jnp.float32).reshape(S_pad, 1)

    # TODO(synk): eval-path `aug_vision` (numpy-RNG, data-dependent dynamic shapes)
    # has no clean Pallas equivalent; training-path lengths (all regions) are used.
    bt = _pick_batch_tile(B, S_pad)
    return vit_encoder(patches, base, attn_bias, pool_w, params,
                       num_heads=num_heads, bt=bt)            # [B, E]


# ----------------------------------- main -------------------------------------

if __name__ == "__main__":
    B, C, H, W = 2, 3, 16, 16
    PATCH = 8
    D = 32            # ViT hidden size (img_dim)
    N_LAYERS = 2
    N_HEADS = 1       # synthetic ViT config (multi-head path exists but is untested here)
    MLP_DIM = 4 * D
    EMB = 32          # emb_size
    P = (H // PATCH) * (W // PATCH)
    S = P + 1                      # patches + CLS
    S_PAD = ((S + 7) // 8) * 8     # sublane-aligned token count

    key = jax.random.PRNGKey(0)
    k_img, k_par = jax.random.split(key)
    img = jax.random.normal(k_img, (B, C, H, W), jnp.float32)
    params = init_params(k_par, C=C, patch=PATCH, D=D, n_layers=N_LAYERS,
                         mlp_dim=MLP_DIM, E=EMB, S_pad=S_PAD, S_valid=S)

    feats = encoder_image_vit_forward(img, params, patch=PATCH, num_heads=N_HEADS)
    feats = jax.block_until_ready(feats)
    assert feats.shape == (B, EMB)
    assert bool(jnp.all(jnp.isfinite(feats)))
    # l2norm sanity: unit-norm rows
    assert bool(jnp.allclose(jnp.linalg.norm(feats, axis=-1), 1.0, atol=1e-3))
    print("KERNEL_OK")
</pallas_src>

<mosaic_0001>
module attributes {stable_mosaic.version = 11 : i64} {
  func.func @_vit_fused_kernel(%arg0: i32, %arg1: i32, %arg2: memref<2x8x192xbf16, #tpu.memory_space<vmem>>, %arg3: memref<1x8x32xf32, #tpu.memory_space<vmem>>, %arg4: memref<192x32xbf16, #tpu.memory_space<vmem>>, %arg5: memref<1x8xf32, #tpu.memory_space<vmem>>, %arg6: memref<8x1xf32, #tpu.memory_space<vmem>>, %arg7: memref<1x16x32xf32, #tpu.memory_space<vmem>>, %arg8: memref<1x1x128xf32, #tpu.memory_space<vmem>>, %arg9: memref<1x32x32xbf16, #tpu.memory_space<vmem>>, %arg10: memref<1x32x32xbf16, #tpu.memory_space<vmem>>, %arg11: memref<1x32x32xbf16, #tpu.memory_space<vmem>>, %arg12: memref<1x32x32xbf16, #tpu.memory_space<vmem>>, %arg13: memref<1x32x128xbf16, #tpu.memory_space<vmem>>, %arg14: memref<1x128x32xbf16, #tpu.memory_space<vmem>>, %arg15: memref<1x32xf32, #tpu.memory_space<vmem>>, %arg16: memref<1x32xf32, #tpu.memory_space<vmem>>, %arg17: memref<32x32xbf16, #tpu.memory_space<vmem>>, %arg18: memref<1x32xf32, #tpu.memory_space<vmem>>, %arg19: memref<32x16xbf16, #tpu.memory_space<vmem>>, %arg20: memref<1x16xf32, #tpu.memory_space<vmem>>, %arg21: memref<16x32xbf16, #tpu.memory_space<vmem>>, %arg22: memref<1x32xf32, #tpu.memory_space<vmem>>, %arg23: memref<2x32xf32, #tpu.memory_space<vmem>>, %arg24: memref<2x8x32xf32, #tpu.memory_space<vmem>>) attributes {dimension_semantics = [#tpu.dimension_semantics<parallel>, #tpu.dimension_semantics<arbitrary>], iteration_bounds = array<i64: 1, 2>, scalar_prefetch = 0 : i64, scratch_operands = 1 : i64, tpu.core_type = #tpu.core_type<tc>, window_params = [{transform_indices = @transform_0, window_bounds = array<i64: 2, 8, 192>}, {pipeline_mode = #tpu.pipeline_mode<synchronous>, transform_indices = @transform_1, window_bounds = array<i64: 1, 8, 32>}, {pipeline_mode = #tpu.pipeline_mode<synchronous>, transform_indices = @transform_2, window_bounds = array<i64: 192, 32>}, {pipeline_mode = #tpu.pipeline_mode<synchronous>, transform_indices = @transform_3, window_bounds = array<i64: 1, 8>}, {pipeline_mode = #tpu.pipeline_mode<synchronous>, transform_indices = @transform_4, window_bounds = array<i64: 8, 1>}, {transform_indices = @transform_5, window_bounds = array<i64: 1, 16, 32>}, {transform_indices = @transform_6, window_bounds = array<i64: 1, 1, 128>}, {transform_indices = @transform_7, window_bounds = array<i64: 1, 32, 32>}, {transform_indices = @transform_8, window_bounds = array<i64: 1, 32, 32>}, {transform_indices = @transform_9, window_bounds = array<i64: 1, 32, 32>}, {transform_indices = @transform_10, window_bounds = array<i64: 1, 32, 32>}, {transform_indices = @transform_11, window_bounds = array<i64: 1, 32, 128>}, {transform_indices = @transform_12, window_bounds = array<i64: 1, 128, 32>}, {pipeline_mode = #tpu.pipeline_mode<synchronous>, transform_indices = @transform_13, window_bounds = array<i64: 1, 32>}, {pipeline_mode = #tpu.pipeline_mode<synchronous>, transform_indices = @transform_14, window_bounds = array<i64: 1, 32>}, {pipeline_mode = #tpu.pipeline_mode<synchronous>, transform_indices = @transform_15, window_bounds = array<i64: 32, 32>}, {pipeline_mode = #tpu.pipeline_mode<synchronous>, transform_indices = @transform_16, window_bounds = array<i64: 1, 32>}, {pipeline_mode = #tpu.pipeline_mode<synchronous>, transform_indices = @transform_17, window_bounds = array<i64: 32, 16>}, {pipeline_mode = #tpu.pipeline_mode<synchronous>, transform_indices = @transform_18, window_bounds = array<i64: 1, 16>}, {pipeline_mode = #tpu.pipeline_mode<synchronous>, transform_indices = @transform_19, window_bounds = array<i64: 16, 32>}, {pipeline_mode = #tpu.pipeline_mode<synchronous>, transform_indices = @transform_20, window_bounds = array<i64: 1, 32>}, {transform_indices = @transform_21, window_bounds = array<i64: 2, 32>}]} {
    %c0_i32 = arith.constant 0 : i32
    %0 = arith.cmpi eq, %arg1, %c0_i32 : i32
    %1 = arith.extui %0 : i1 to i32
    %c0_i32_0 = arith.constant 0 : i32
    %2 = arith.cmpi ne, %1, %c0_i32_0 : i32
    scf.if %2 {
      %c0_57 = arith.constant 0 : index
      %c0_58 = arith.constant 0 : index
      %c0_59 = arith.constant 0 : index
      %142 = vector.load %arg2[%c0_57, %c0_58, %c0_59] : memref<2x8x192xbf16, #tpu.memory_space<vmem>>, vector<2x8x192xbf16>
      %143 = vector.shape_cast %142 : vector<2x8x192xbf16> to vector<16x192xbf16>
      %c0_60 = arith.constant 0 : index
      %c0_61 = arith.constant 0 : index
      %144 = vector.load %arg4[%c0_60, %c0_61] : memref<192x32xbf16, #tpu.memory_space<vmem>>, vector<192x32xbf16>
      %cst_62 = arith.constant dense<0.000000e+00> : vector<16x32xf32>
      %145 = tpu.matmul %143, %144, %cst_62 {dimension_numbers = #tpu.dot_dimension_numbers<[1], [0], [0], [1], [0, 0, 1, 1], [], []>} : vector<16x192xbf16>, vector<192x32xbf16>, vector<16x32xf32> -> vector<16x32xf32>
      %146 = vector.shape_cast %145 : vector<16x32xf32> to vector<2x8x32xf32>
      %c0_63 = arith.constant 0 : index
      %c0_64 = arith.constant 0 : index
      %c0_65 = arith.constant 0 : index
      %147 = vector.load %arg3[%c0_63, %c0_64, %c0_65] : memref<1x8x32xf32, #tpu.memory_space<vmem>>, vector<1x8x32xf32>
      %148 = vector.broadcast %147 : vector<1x8x32xf32> to vector<2x8x32xf32>
      %149 = arith.addf %146, %148 : vector<2x8x32xf32>
      %c0_66 = arith.constant 0 : index
      %c0_67 = arith.constant 0 : index
      %c0_68 = arith.constant 0 : index
      %150 = vector.load %arg24[%c0_66, %c0_67, %c0_68] : memref<2x8x32xf32, #tpu.memory_space<vmem>>, vector<2x8x32xf32>
      tpu.vector_store %arg24[%c0_66, %c0_67, %c0_68], %149 {strides = array<i32>} : memref<2x8x32xf32, #tpu.memory_space<vmem>>, vector<2x8x32xf32>,
    } else {
    }
    %c0 = arith.constant 0 : index
    %c0_1 = arith.constant 0 : index
    %c0_2 = arith.constant 0 : index
    %3 = vector.load %arg24[%c0, %c0_1, %c0_2] : memref<2x8x32xf32, #tpu.memory_space<vmem>>, vector<2x8x32xf32>
    %4 = vector.shape_cast %3 : vector<2x8x32xf32> to vector<16x32xf32>
    %c0_3 = arith.constant 0 : index
    %c0_4 = arith.constant 0 : index
    %c0_5 = arith.constant 0 : index
    %5 = vector.load %arg7[%c0_3, %c0_4, %c0_5] : memref<1x16x32xf32, #tpu.memory_space<vmem>>, vector<1x16x32xf32>
    %6 = vector.shape_cast %5 : vector<1x16x32xf32> to vector<16x32xf32>
    %7 = vector.extract_strided_slice %6 {offsets = [0, 0], sizes = [1, 32], strides = [1, 1]} : vector<16x32xf32> to vector<1x32xf32>
    %8 = vector.extract_strided_slice %6 {offsets = [1, 0], sizes = [1, 32], strides = [1, 1]} : vector<16x32xf32> to vector<1x32xf32>
    %9 = vector.extract_strided_slice %6 {offsets = [2, 0], sizes = [1, 32], strides = [1, 1]} : vector<16x32xf32> to vector<1x32xf32>
    %10 = vector.extract_strided_slice %6 {offsets = [3, 0], sizes = [1, 32], strides = [1, 1]} : vector<16x32xf32> to vector<1x32xf32>
    %11 = vector.extract_strided_slice %6 {offsets = [4, 0], sizes = [1, 32], strides = [1, 1]} : vector<16x32xf32> to vector<1x32xf32>
    %12 = vector.extract_strided_slice %6 {offsets = [5, 0], sizes = [1, 32], strides = [1, 1]} : vector<16x32xf32> to vector<1x32xf32>
    %13 = vector.extract_strided_slice %6 {offsets = [6, 0], sizes = [1, 32], strides = [1, 1]} : vector<16x32xf32> to vector<1x32xf32>
    %14 = vector.extract_strided_slice %6 {offsets = [7, 0], sizes = [1, 32], strides = [1, 1]} : vector<16x32xf32> to vector<1x32xf32>
    %15 = vector.extract_strided_slice %6 {offsets = [8, 0], sizes = [1, 32], strides = [1, 1]} : vector<16x32xf32> to vector<1x32xf32>
    %cst = arith.constant dense<0.000000e+00> : vector<16xf32>
    %16 = vector.multi_reduction <add>, %4, %cst [1] : vector<16x32xf32> to vector<16xf32>
    %17 = vector.shape_cast %16 : vector<16xf32> to vector<16x1xf32>
    %cst_6 = arith.constant 3.200000e+01 : f32
    %18 = vector.broadcast %cst_6 : f32 to vector<16x1xf32>
    %19 = arith.divf %17, %18 : vector<16x1xf32>
    %20 = vector.broadcast %19 : vector<16x1xf32> to vector<16x32xf32>
    %21 = arith.subf %4, %20 : vector<16x32xf32>
    %22 = arith.mulf %21, %21 : vector<16x32xf32>
    %cst_7 = arith.constant dense<0.000000e+00> : vector<16xf32>
    %23 = vector.multi_reduction <add>, %22, %cst_7 [1] : vector<16x32xf32> to vector<16xf32>
    %24 = vector.shape_cast %23 : vector<16xf32> to vector<16x1xf32>
    %cst_8 = arith.constant 3.200000e+01 : f32
    %25 = vector.broadcast %cst_8 : f32 to vector<16x1xf32>
    %26 = arith.divf %24, %25 : vector<16x1xf32>
    %27 = vector.broadcast %19 : vector<16x1xf32> to vector<16x32xf32>
    %28 = arith.subf %4, %27 : vector<16x32xf32>
    %cst_9 = arith.constant 9.99999996E-13 : f32
    %29 = vector.broadcast %cst_9 : f32 to vector<16x1xf32>
    %30 = arith.addf %26, %29 : vector<16x1xf32>
    %31 = math.rsqrt %30 : vector<16x1xf32>
    %32 = vector.broadcast %31 : vector<16x1xf32> to vector<16x32xf32>
    %33 = arith.mulf %28, %32 : vector<16x32xf32>
    %34 = vector.broadcast %7 : vector<1x32xf32> to vector<16x32xf32>
    %35 = arith.mulf %33, %34 : vector<16x32xf32>
    %36 = vector.broadcast %8 : vector<1x32xf32> to vector<16x32xf32>
    %37 = arith.addf %35, %36 : vector<16x32xf32>
    %38 = arith.truncf %37 : vector<16x32xf32> to vector<16x32xbf16>
    %c0_10 = arith.constant 0 : index
    %c0_11 = arith.constant 0 : index
    %c0_12 = arith.constant 0 : index
    %39 = vector.load %arg9[%c0_10, %c0_11, %c0_12] : memref<1x32x32xbf16, #tpu.memory_space<vmem>>, vector<1x32x32xbf16>
    %40 = vector.shape_cast %39 : vector<1x32x32xbf16> to vector<32x32xbf16>
    %cst_13 = arith.constant dense<0.000000e+00> : vector<16x32xf32>
    %41 = tpu.matmul %38, %40, %cst_13 {dimension_numbers = #tpu.dot_dimension_numbers<[1], [0], [0], [1], [0, 0, 1, 1], [], []>} : vector<16x32xbf16>, vector<32x32xbf16>, vector<16x32xf32> -> vector<16x32xf32>
    %42 = vector.broadcast %11 : vector<1x32xf32> to vector<16x32xf32>
    %43 = arith.addf %41, %42 : vector<16x32xf32>
    %c0_14 = arith.constant 0 : index
    %c0_15 = arith.constant 0 : index
    %c0_16 = arith.constant 0 : index
    %44 = vector.load %arg10[%c0_14, %c0_15, %c0_16] : memref<1x32x32xbf16, #tpu.memory_space<vmem>>, vector<1x32x32xbf16>
    %45 = vector.shape_cast %44 : vector<1x32x32xbf16> to vector<32x32xbf16>
    %cst_17 = arith.constant dense<0.000000e+00> : vector<16x32xf32>
    %46 = tpu.matmul %38, %45, %cst_17 {dimension_numbers = #tpu.dot_dimension_numbers<[1], [0], [0], [1], [0, 0, 1, 1], [], []>} : vector<16x32xbf16>, vector<32x32xbf16>, vector<16x32xf32> -> vector<16x32xf32>
    %47 = vector.broadcast %12 : vector<1x32xf32> to vector<16x32xf32>
    %48 = arith.addf %46, %47 : vector<16x32xf32>
    %c0_18 = arith.constant 0 : index
    %c0_19 = arith.constant 0 : index
    %c0_20 = arith.constant 0 : index
    %49 = vector.load %arg11[%c0_18, %c0_19, %c0_20] : memref<1x32x32xbf16, #tpu.memory_space<vmem>>, vector<1x32x32xbf16>
    %50 = vector.shape_cast %49 : vector<1x32x32xbf16> to vector<32x32xbf16>
    %cst_21 = arith.constant dense<0.000000e+00> : vector<16x32xf32>
    %51 = tpu.matmul %38, %50, %cst_21 {dimension_numbers = #tpu.dot_dimension_numbers<[1], [0], [0], [1], [0, 0, 1, 1], [], []>} : vector<16x32xbf16>, vector<32x32xbf16>, vector<16x32xf32> -> vector<16x32xf32>
    %52 = vector.broadcast %13 : vector<1x32xf32> to vector<16x32xf32>
    %53 = arith.addf %51, %52 : vector<16x32xf32>
    %54 = vector.shape_cast %43 : vector<16x32xf32> to vector<2x8x32xf32>
    %55 = vector.shape_cast %48 : vector<16x32xf32> to vector<2x8x32xf32>
    %56 = vector.shape_cast %53 : vector<16x32xf32> to vector<2x8x32xf32>
    %57 = arith.truncf %54 : vector<2x8x32xf32> to vector<2x8x32xbf16>
    %58 = arith.truncf %55 : vector<2x8x32xf32> to vector<2x8x32xbf16>
    "tpu.trace_start"() <{level = 10 : i32, message = "bqd,bkd->bqk"}> : () -> ()
    %cst_22 = arith.constant dense<0.000000e+00> : vector<2x8x8xf32>
    %59 = tpu.matmul %57, %58, %cst_22 {dimension_numbers = #tpu.dot_dimension_numbers<[2], [2], [1], [1], [0, 0, 0, 1, 1, 1], [0], [0]>} : vector<2x8x32xbf16>, vector<2x8x32xbf16>, vector<2x8x8xf32> -> vector<2x8x8xf32>
    "tpu.trace_stop"() : () -> ()
    %cst_23 = arith.constant 0.176776692 : f32
    %60 = vector.broadcast %cst_23 : f32 to vector<2x8x8xf32>
    %61 = arith.mulf %59, %60 : vector<2x8x8xf32>
    %c0_24 = arith.constant 0 : index
    %c0_25 = arith.constant 0 : index
    %62 = vector.load %arg5[%c0_24, %c0_25] : memref<1x8xf32, #tpu.memory_space<vmem>>, vector<1x8xf32>
    %63 = vector.shape_cast %62 : vector<1x8xf32> to vector<1x1x8xf32>
    %64 = vector.broadcast %63 : vector<1x1x8xf32> to vector<2x8x8xf32>
    %65 = arith.addf %61, %64 : vector<2x8x8xf32>
    %cst_26 = arith.constant dense<0xFF800000> : vector<2x8xf32>
    %66 = vector.multi_reduction <maximumf>, %65, %cst_26 [2] : vector<2x8x8xf32> to vector<2x8xf32>
    %67 = vector.shape_cast %66 : vector<2x8xf32> to vector<2x8x1xf32>
    %68 = vector.broadcast %67 : vector<2x8x1xf32> to vector<2x8x8xf32>
    %69 = arith.subf %65, %68 : vector<2x8x8xf32>
    %70 = math.exp %69 : vector<2x8x8xf32>
    %cst_27 = arith.constant dense<0.000000e+00> : vector<2x8xf32>
    %71 = vector.multi_reduction <add>, %70, %cst_27 [2] : vector<2x8x8xf32> to vector<2x8xf32>
    %72 = vector.shape_cast %71 : vector<2x8xf32> to vector<2x8x1xf32>
    %73 = tpu.reciprocal %72 {approx = true} : vector<2x8x1xf32> -> vector<2x8x1xf32>
    %74 = vector.broadcast %73 : vector<2x8x1xf32> to vector<2x8x8xf32>
    %75 = arith.mulf %70, %74 : vector<2x8x8xf32>
    %76 = arith.truncf %75 : vector<2x8x8xf32> to vector<2x8x8xbf16>
    %77 = arith.truncf %56 : vector<2x8x32xf32> to vector<2x8x32xbf16>
    "tpu.trace_start"() <{level = 10 : i32, message = "bqk,bkd->bqd"}> : () -> ()
    %cst_28 = arith.constant dense<0.000000e+00> : vector<2x8x32xf32>
    %78 = tpu.matmul %76, %77, %cst_28 {dimension_numbers = #tpu.dot_dimension_numbers<[2], [1], [1], [2], [0, 0, 0, 1, 1, 2], [0], [0]>} : vector<2x8x8xbf16>, vector<2x8x32xbf16>, vector<2x8x32xf32> -> vector<2x8x32xf32>
    "tpu.trace_stop"() : () -> ()
    %79 = vector.shape_cast %78 : vector<2x8x32xf32> to vector<16x32xf32>
    %80 = arith.truncf %79 : vector<16x32xf32> to vector<16x32xbf16>
    %c0_29 = arith.constant 0 : index
    %c0_30 = arith.constant 0 : index
    %c0_31 = arith.constant 0 : index
    %81 = vector.load %arg12[%c0_29, %c0_30, %c0_31] : memref<1x32x32xbf16, #tpu.memory_space<vmem>>, vector<1x32x32xbf16>
    %82 = vector.shape_cast %81 : vector<1x32x32xbf16> to vector<32x32xbf16>
    %cst_32 = arith.constant dense<0.000000e+00> : vector<16x32xf32>
    %83 = tpu.matmul %80, %82, %cst_32 {dimension_numbers = #tpu.dot_dimension_numbers<[1], [0], [0], [1], [0, 0, 1, 1], [], []>} : vector<16x32xbf16>, vector<32x32xbf16>, vector<16x32xf32> -> vector<16x32xf32>
    %84 = vector.broadcast %14 : vector<1x32xf32> to vector<16x32xf32>
    %85 = arith.addf %83, %84 : vector<16x32xf32>
    %86 = arith.addf %4, %85 : vector<16x32xf32>
    %cst_33 = arith.constant dense<0.000000e+00> : vector<16xf32>
    %87 = vector.multi_reduction <add>, %86, %cst_33 [1] : vector<16x32xf32> to vector<16xf32>
    %88 = vector.shape_cast %87 : vector<16xf32> to vector<16x1xf32>
    %cst_34 = arith.constant 3.200000e+01 : f32
    %89 = vector.broadcast %cst_34 : f32 to vector<16x1xf32>
    %90 = arith.divf %88, %89 : vector<16x1xf32>
    %91 = vector.broadcast %90 : vector<16x1xf32> to vector<16x32xf32>
    %92 = arith.subf %86, %91 : vector<16x32xf32>
    %93 = arith.mulf %92, %92 : vector<16x32xf32>
    %cst_35 = arith.constant dense<0.000000e+00> : vector<16xf32>
    %94 = vector.multi_reduction <add>, %93, %cst_35 [1] : vector<16x32xf32> to vector<16xf32>
    %95 = vector.shape_cast %94 : vector<16xf32> to vector<16x1xf32>
    %cst_36 = arith.constant 3.200000e+01 : f32
    %96 = vector.broadcast %cst_36 : f32 to vector<16x1xf32>
    %97 = arith.divf %95, %96 : vector<16x1xf32>
    %98 = vector.broadcast %90 : vector<16x1xf32> to vector<16x32xf32>
    %99 = arith.subf %86, %98 : vector<16x32xf32>
    %cst_37 = arith.constant 9.99999996E-13 : f32
    %100 = vector.broadcast %cst_37 : f32 to vector<16x1xf32>
    %101 = arith.addf %97, %100 : vector<16x1xf32>
    %102 = math.rsqrt %101 : vector<16x1xf32>
    %103 = vector.broadcast %102 : vector<16x1xf32> to vector<16x32xf32>
    %104 = arith.mulf %99, %103 : vector<16x32xf32>
    %105 = vector.broadcast %9 : vector<1x32xf32> to vector<16x32xf32>
    %106 = arith.mulf %104, %105 : vector<16x32xf32>
    %107 = vector.broadcast %10 : vector<1x32xf32> to vector<16x32xf32>
    %108 = arith.addf %106, %107 : vector<16x32xf32>
    %109 = arith.truncf %108 : vector<16x32xf32> to vector<16x32xbf16>
    %c0_38 = arith.constant 0 : index
    %c0_39 = arith.constant 0 : index
    %c0_40 = arith.constant 0 : index
    %110 = vector.load %arg13[%c0_38, %c0_39, %c0_40] : memref<1x32x128xbf16, #tpu.memory_space<vmem>>, vector<1x32x128xbf16>
    %111 = vector.shape_cast %110 : vector<1x32x128xbf16> to vector<32x128xbf16>
    %cst_41 = arith.constant dense<0.000000e+00> : vector<16x128xf32>
    %112 = tpu.matmul %109, %111, %cst_41 {dimension_numbers = #tpu.dot_dimension_numbers<[1], [0], [0], [1], [0, 0, 1, 1], [], []>} : vector<16x32xbf16>, vector<32x128xbf16>, vector<16x128xf32> -> vector<16x128xf32>
    %c0_42 = arith.constant 0 : index
    %c0_43 = arith.constant 0 : index
    %c0_44 = arith.constant 0 : index
    %113 = vector.load %arg8[%c0_42, %c0_43, %c0_44] : memref<1x1x128xf32, #tpu.memory_space<vmem>>, vector<1x1x128xf32>
    %114 = vector.shape_cast %113 : vector<1x1x128xf32> to vector<1x128xf32>
    %115 = vector.broadcast %114 : vector<1x128xf32> to vector<16x128xf32>
    %116 = arith.addf %112, %115 : vector<16x128xf32>
    %117 = arith.mulf %116, %116 : vector<16x128xf32>
    %118 = arith.mulf %116, %117 : vector<16x128xf32>
    %cst_45 = arith.constant 4.471500e-02 : f32
    %119 = vector.broadcast %cst_45 : f32 to vector<16x128xf32>
    %120 = arith.mulf %119, %118 : vector<16x128xf32>
    %121 = arith.addf %116, %120 : vector<16x128xf32>
    %cst_46 = arith.constant 0.797884583 : f32
    %122 = vector.broadcast %cst_46 : f32 to vector<16x128xf32>
    %123 = arith.mulf %122, %121 : vector<16x128xf32>
    %124 = math.tanh %123 : vector<16x128xf32>
    %cst_47 = arith.constant 1.000000e+00 : f32
    %125 = vector.broadcast %cst_47 : f32 to vector<16x128xf32>
    %126 = arith.addf %125, %124 : vector<16x128xf32>
    %cst_48 = arith.constant 5.000000e-01 : f32
    %127 = vector.broadcast %cst_48 : f32 to vector<16x128xf32>
    %128 = arith.mulf %127, %126 : vector<16x128xf32>
    %129 = arith.mulf %116, %128 : vector<16x128xf32>
    %130 = arith.truncf %129 : vector<16x128xf32> to vector<16x128xbf16>
    %c0_49 = arith.constant 0 : index
    %c0_50 = arith.constant 0 : index
    %c0_51 = arith.constant 0 : index
    %131 = vector.load %arg14[%c0_49, %c0_50, %c0_51] : memref<1x128x32xbf16, #tpu.memory_space<vmem>>, vector<1x128x32xbf16>
    %132 = vector.shape_cast %131 : vector<1x128x32xbf16> to vector<128x32xbf16>
    %cst_52 = arith.constant dense<0.000000e+00> : vector<16x32xf32>
    %133 = tpu.matmul %130, %132, %cst_52 {dimension_numbers = #tpu.dot_dimension_numbers<[1], [0], [0], [1], [0, 0, 1, 1], [], []>} : vector<16x128xbf16>, vector<128x32xbf16>, vector<16x32xf32> -> vector<16x32xf32>
    %134 = vector.broadcast %15 : vector<1x32xf32> to vector<16x32xf32>
    %135 = arith.addf %133, %134 : vector<16x32xf32>
    %136 = arith.addf %86, %135 : vector<16x32xf32>
    %137 = vector.shape_cast %136 : vector<16x32xf32> to vector<2x8x32xf32>
    %c0_53 = arith.constant 0 : index
    %c0_54 = arith.constant 0 : index
    %c0_55 = arith.constant 0 : index
    %138 = vector.load %arg24[%c0_53, %c0_54, %c0_55] : memref<2x8x32xf32, #tpu.memory_space<vmem>>, vector<2x8x32xf32>
    tpu.vector_store %arg24[%c0_53, %c0_54, %c0_55], %137 {strides = array<i32>} : memref<2x8x32xf32, #tpu.memory_space<vmem>>, vector<2x8x32xf32>,
    %c1_i32 = arith.constant 1 : i32
    %139 = arith.cmpi eq, %arg1, %c1_i32 : i32
    %140 = arith.extui %139 : i1 to i32
    %c0_i32_56 = arith.constant 0 : i32
    %141 = arith.cmpi ne, %140, %c0_i32_56 : i32
    scf.if %141 {
      %c0_57 = arith.constant 0 : index
      %c0_58 = arith.constant 0 : index
      %142 = vector.load %arg15[%c0_57, %c0_58] : memref<1x32xf32, #tpu.memory_space<vmem>>, vector<1x32xf32>
      %c0_59 = arith.constant 0 : index
      %c0_60 = arith.constant 0 : index
      %143 = vector.load %arg16[%c0_59, %c0_60] : memref<1x32xf32, #tpu.memory_space<vmem>>, vector<1x32xf32>
      %cst_61 = arith.constant dense<0.000000e+00> : vector<16xf32>
      %144 = vector.multi_reduction <add>, %136, %cst_61 [1] : vector<16x32xf32> to vector<16xf32>
      %145 = vector.shape_cast %144 : vector<16xf32> to vector<16x1xf32>
      %cst_62 = arith.constant 3.200000e+01 : f32
      %146 = vector.broadcast %cst_62 : f32 to vector<16x1xf32>
      %147 = arith.divf %145, %146 : vector<16x1xf32>
      %148 = vector.broadcast %147 : vector<16x1xf32> to vector<16x32xf32>
      %149 = arith.subf %136, %148 : vector<16x32xf32>
      %150 = arith.mulf %149, %149 : vector<16x32xf32>
      %cst_63 = arith.constant dense<0.000000e+00> : vector<16xf32>
      %151 = vector.multi_reduction <add>, %150, %cst_63 [1] : vector<16x32xf32> to vector<16xf32>
      %152 = vector.shape_cast %151 : vector<16xf32> to vector<16x1xf32>
      %cst_64 = arith.constant 3.200000e+01 : f32
      %153 = vector.broadcast %cst_64 : f32 to vector<16x1xf32>
      %154 = arith.divf %152, %153 : vector<16x1xf32>
      %155 = vector.broadcast %147 : vector<16x1xf32> to vector<16x32xf32>
      %156 = arith.subf %136, %155 : vector<16x32xf32>
      %cst_65 = arith.constant 9.99999996E-13 : f32
      %157 = vector.broadcast %cst_65 : f32 to vector<16x1xf32>
      %158 = arith.addf %154, %157 : vector<16x1xf32>
      %159 = math.rsqrt %158 : vector<16x1xf32>
      %160 = vector.broadcast %159 : vector<16x1xf32> to vector<16x32xf32>
      %161 = arith.mulf %156, %160 : vector<16x32xf32>
      %162 = vector.broadcast %142 : vector<1x32xf32> to vector<16x32xf32>
      %163 = arith.mulf %161, %162 : vector<16x32xf32>
      %164 = vector.broadcast %143 : vector<1x32xf32> to vector<16x32xf32>
      %165 = arith.addf %163, %164 : vector<16x32xf32>
      %166 = arith.truncf %165 : vector<16x32xf32> to vector<16x32xbf16>
      %c0_66 = arith.constant 0 : index
      %c0_67 = arith.constant 0 : index
      %167 = vector.load %arg17[%c0_66, %c0_67] : memref<32x32xbf16, #tpu.memory_space<vmem>>, vector<32x32xbf16>
      %cst_68 = arith.constant dense<0.000000e+00> : vector<16x32xf32>
      %168 = tpu.matmul %166, %167, %cst_68 {dimension_numbers = #tpu.dot_dimension_numbers<[1], [0], [0], [1], [0, 0, 1, 1], [], []>} : vector<16x32xbf16>, vector<32x32xbf16>, vector<16x32xf32> -> vector<16x32xf32>
      %c0_69 = arith.constant 0 : index
      %c0_70 = arith.constant 0 : index
      %169 = vector.load %arg18[%c0_69, %c0_70] : memref<1x32xf32, #tpu.memory_space<vmem>>, vector<1x32xf32>
      %170 = vector.broadcast %169 : vector<1x32xf32> to vector<16x32xf32>
      %171 = arith.addf %168, %170 : vector<16x32xf32>
      %c0_71 = arith.constant 0 : index
      %c0_72 = arith.constant 0 : index
      %172 = vector.load %arg19[%c0_71, %c0_72] : memref<32x16xbf16, #tpu.memory_space<vmem>>, vector<32x16xbf16>
      %cst_73 = arith.constant dense<0.000000e+00> : vector<16x16xf32>
      %173 = tpu.matmul %166, %172, %cst_73 {dimension_numbers = #tpu.dot_dimension_numbers<[1], [0], [0], [1], [0, 0, 1, 1], [], []>} : vector<16x32xbf16>, vector<32x16xbf16>, vector<16x16xf32> -> vector<16x16xf32>
      %c0_74 = arith.constant 0 : index
      %c0_75 = arith.constant 0 : index
      %174 = vector.load %arg20[%c0_74, %c0_75] : memref<1x16xf32, #tpu.memory_space<vmem>>, vector<1x16xf32>
      %175 = vector.broadcast %174 : vector<1x16xf32> to vector<16x16xf32>
      %176 = arith.addf %173, %175 : vector<16x16xf32>
      %cst_76 = arith.constant 0.000000e+00 : f32
      %177 = vector.broadcast %cst_76 : f32 to vector<16x16xf32>
      %178 = arith.maximumf %176, %177 : vector<16x16xf32>
      %179 = arith.truncf %178 : vector<16x16xf32> to vector<16x16xbf16>
      %c0_77 = arith.constant 0 : index
      %c0_78 = arith.constant 0 : index
      %180 = vector.load %arg21[%c0_77, %c0_78] : memref<16x32xbf16, #tpu.memory_space<vmem>>, vector<16x32xbf16>
      %cst_79 = arith.constant dense<0.000000e+00> : vector<16x32xf32>
      %181 = tpu.matmul %179, %180, %cst_79 {dimension_numbers = #tpu.dot_dimension_numbers<[1], [0], [0], [1], [0, 0, 1, 1], [], []>} : vector<16x16xbf16>, vector<16x32xbf16>, vector<16x32xf32> -> vector<16x32xf32>
      %c0_80 = arith.constant 0 : index
      %c0_81 = arith.constant 0 : index
      %182 = vector.load %arg22[%c0_80, %c0_81] : memref<1x32xf32, #tpu.memory_space<vmem>>, vector<1x32xf32>
      %183 = vector.broadcast %182 : vector<1x32xf32> to vector<16x32xf32>
      %184 = arith.addf %181, %183 : vector<16x32xf32>
      %185 = arith.addf %171, %184 : vector<16x32xf32>
      %186 = vector.shape_cast %185 : vector<16x32xf32> to vector<2x8x32xf32>
      %c0_82 = arith.constant 0 : index
      %c0_83 = arith.constant 0 : index
      %187 = vector.load %arg6[%c0_82, %c0_83] : memref<8x1xf32, #tpu.memory_space<vmem>>, vector<8x1xf32>
      %188 = vector.shape_cast %187 : vector<8x1xf32> to vector<1x8x1xf32>
      %189 = vector.broadcast %188 : vector<1x8x1xf32> to vector<2x8x32xf32>
      %190 = arith.mulf %186, %189 : vector<2x8x32xf32>
      %cst_84 = arith.constant dense<0.000000e+00> : vector<2x32xf32>
      %191 = vector.multi_reduction <add>, %190, %cst_84 [1] : vector<2x8x32xf32> to vector<2x32xf32>
      %192 = arith.mulf %191, %191 : vector<2x32xf32>
      %cst_85 = arith.constant dense<0.000000e+00> : vector<2xf32>
      %193 = vector.multi_reduction <add>, %192, %cst_85 [1] : vector<2x32xf32> to vector<2xf32>
      %194 = vector.shape_cast %193 : vector<2xf32> to vector<2x1xf32>
      %cst_86 = arith.constant 1.000000e-16 : f32
      %195 = vector.broadcast %cst_86 : f32 to vector<2x1xf32>
      %196 = arith.addf %194, %195 : vector<2x1xf32>
      %197 = math.rsqrt %196 : vector<2x1xf32>
      %198 = vector.broadcast %197 : vector<2x1xf32> to vector<2x32xf32>
      %199 = arith.mulf %191, %198 : vector<2x32xf32>
      %c0_87 = arith.constant 0 : index
      %c0_88 = arith.constant 0 : index
      %200 = vector.load %arg23[%c0_87, %c0_88] : memref<2x32xf32, #tpu.memory_space<vmem>>, vector<2x32xf32>
      tpu.vector_store %arg23[%c0_87, %c0_88], %199 {strides = array<i32>} : memref<2x32xf32, #tpu.memory_space<vmem>>, vector<2x32xf32>,
    } else {
    }
    return
  }
  func.func @transform_0(%arg0: i32, %arg1: i32) -> (i32, i32, i32) {
    %c0_i32 = arith.constant 0 : i32
    %c0_i32_0 = arith.constant 0 : i32
    %c0_i32_1 = arith.constant 0 : i32
    return %arg0, %c0_i32, %c0_i32_0 : i32, i32, i32
  }
  func.func @transform_1(%arg0: i32, %arg1: i32) -> (i32, i32, i32) {
    %c0_i32 = arith.constant 0 : i32
    %c0_i32_0 = arith.constant 0 : i32
    %c0_i32_1 = arith.constant 0 : i32
    %c0_i32_2 = arith.constant 0 : i32
    return %c0_i32, %c0_i32_0, %c0_i32_1 : i32, i32, i32
  }
  func.func @transform_2(%arg0: i32, %arg1: i32) -> (i32, i32) {
    %c0_i32 = arith.constant 0 : i32
    %c0_i32_0 = arith.constant 0 : i32
    %c0_i32_1 = arith.constant 0 : i32
    return %c0_i32, %c0_i32_0 : i32, i32
  }
  func.func @transform_3(%arg0: i32, %arg1: i32) -> (i32, i32) {
    %c0_i32 = arith.constant 0 : i32
    %c0_i32_0 = arith.constant 0 : i32
    %c0_i32_1 = arith.constant 0 : i32
    return %c0_i32, %c0_i32_0 : i32, i32
  }
  func.func @transform_4(%arg0: i32, %arg1: i32) -> (i32, i32) {
    %c0_i32 = arith.constant 0 : i32
    %c0_i32_0 = arith.constant 0 : i32
    %c0_i32_1 = arith.constant 0 : i32
    return %c0_i32, %c0_i32_0 : i32, i32
  }
  func.func @transform_5(%arg0: i32, %arg1: i32) -> (i32, i32, i32) {
    %c0_i32 = arith.constant 0 : i32
    %c0_i32_0 = arith.constant 0 : i32
    %c0_i32_1 = arith.constant 0 : i32
    return %arg1, %c0_i32, %c0_i32_0 : i32, i32, i32
  }
  func.func @transform_6(%arg0: i32, %arg1: i32) -> (i32, i32, i32) {
    %c0_i32 = arith.constant 0 : i32
    %c0_i32_0 = arith.constant 0 : i32
    %c0_i32_1 = arith.constant 0 : i32
    return %arg1, %c0_i32, %c0_i32_0 : i32, i32, i32
  }
  func.func @transform_7(%arg0: i32, %arg1: i32) -> (i32, i32, i32) {
    %c0_i32 = arith.constant 0 : i32
    %c0_i32_0 = arith.constant 0 : i32
    %c0_i32_1 = arith.constant 0 : i32
    return %arg1, %c0_i32, %c0_i32_0 : i32, i32, i32
  }
  func.func @transform_8(%arg0: i32, %arg1: i32) -> (i32, i32, i32) {
    %c0_i32 = arith.constant 0 : i32
    %c0_i32_0 = arith.constant 0 : i32
    %c0_i32_1 = arith.constant 0 : i32
    return %arg1, %c0_i32, %c0_i32_0 : i32, i32, i32
  }
  func.func @transform_9(%arg0: i32, %arg1: i32) -> (i32, i32, i32) {
    %c0_i32 = arith.constant 0 : i32
    %c0_i32_0 = arith.constant 0 : i32
    %c0_i32_1 = arith.constant 0 : i32
    return %arg1, %c0_i32, %c0_i32_0 : i32, i32, i32
  }
  func.func @transform_10(%arg0: i32, %arg1: i32) -> (i32, i32, i32) {
    %c0_i32 = arith.constant 0 : i32
    %c0_i32_0 = arith.constant 0 : i32
    %c0_i32_1 = arith.constant 0 : i32
    return %arg1, %c0_i32, %c0_i32_0 : i32, i32, i32
  }
  func.func @transform_11(%arg0: i32, %arg1: i32) -> (i32, i32, i32) {
    %c0_i32 = arith.constant 0 : i32
    %c0_i32_0 = arith.constant 0 : i32
    %c0_i32_1 = arith.constant 0 : i32
    return %arg1, %c0_i32, %c0_i32_0 : i32, i32, i32
  }
  func.func @transform_12(%arg0: i32, %arg1: i32) -> (i32, i32, i32) {
    %c0_i32 = arith.constant 0 : i32
    %c0_i32_0 = arith.constant 0 : i32
    %c0_i32_1 = arith.constant 0 : i32
    return %arg1, %c0_i32, %c0_i32_0 : i32, i32, i32
  }
  func.func @transform_13(%arg0: i32, %arg1: i32) -> (i32, i32) {
    %c0_i32 = arith.constant 0 : i32
    %c0_i32_0 = arith.constant 0 : i32
    %c0_i32_1 = arith.constant 0 : i32
    return %c0_i32, %c0_i32_0 : i32, i32
  }
  func.func @transform_14(%arg0: i32, %arg1: i32) -> (i32, i32) {
    %c0_i32 = arith.constant 0 : i32
    %c0_i32_0 = arith.constant 0 : i32
    %c0_i32_1 = arith.constant 0 : i32
    return %c0_i32, %c0_i32_0 : i32, i32
  }
  func.func @transform_15(%arg0: i32, %arg1: i32) -> (i32, i32) {
    %c0_i32 = arith.constant 0 : i32
    %c0_i32_0 = arith.constant 0 : i32
    %c0_i32_1 = arith.constant 0 : i32
    return %c0_i32, %c0_i32_0 : i32, i32
  }
  func.func @transform_16(%arg0: i32, %arg1: i32) -> (i32, i32) {
    %c0_i32 = arith.constant 0 : i32
    %c0_i32_0 = arith.constant 0 : i32
    %c0_i32_1 = arith.constant 0 : i32
    return %c0_i32, %c0_i32_0 : i32, i32
  }
  func.func @transform_17(%arg0: i32, %arg1: i32) -> (i32, i32) {
    %c0_i32 = arith.constant 0 : i32
    %c0_i32_0 = arith.constant 0 : i32
    %c0_i32_1 = arith.constant 0 : i32
    return %c0_i32, %c0_i32_0 : i32, i32
  }
  func.func @transform_18(%arg0: i32, %arg1: i32) -> (i32, i32) {
    %c0_i32 = arith.constant 0 : i32
    %c0_i32_0 = arith.constant 0 : i32
    %c0_i32_1 = arith.constant 0 : i32
    return %c0_i32, %c0_i32_0 : i32, i32
  }
  func.func @transform_19(%arg0: i32, %arg1: i32) -> (i32, i32) {
    %c0_i32 = arith.constant 0 : i32
    %c0_i32_0 = arith.constant 0 : i32
    %c0_i32_1 = arith.constant 0 : i32
    return %c0_i32, %c0_i32_0 : i32, i32
  }
  func.func @transform_20(%arg0: i32, %arg1: i32) -> (i32, i32) {
    %c0_i32 = arith.constant 0 : i32
    %c0_i32_0 = arith.constant 0 : i32
    %c0_i32_1 = arith.constant 0 : i32
    return %c0_i32, %c0_i32_0 : i32, i32
  }
  func.func @transform_21(%arg0: i32, %arg1: i32) -> (i32, i32) {
    %c0_i32 = arith.constant 0 : i32
    %c0_i32_0 = arith.constant 0 : i32
    return %arg0, %c0_i32 : i32, i32
  }
}

</mosaic_0001>

<bundles_post_ra>
// kernel: tpu_custom_call.1
= control target key start
LH: loop header
LB: loop body
LE: loop exit
PB: predicated region body
PF: predicated region fallthrough
CT: control target
= control target key end

     0   :  { %s2595_s0 = inlined_call_operand.vmem [shape: bf16[2,8,192], index: 0, kind: input, shape index: {}]   ;;  %s2596_s1 = inlined_call_operand.vmem [shape: f32[1,8,32], index: 1, kind: input, shape index: {}]   ;;  %s2597_s2 = inlined_call_operand.vmem [shape: bf16[192,32], index: 2, kind: input, shape index: {}]   ;;  %s2598_s3 = inlined_call_operand.vmem [shape: f32[1,8], index: 3, kind: input, shape index: {}]   ;;  %s2599_s4 = inlined_call_operand.vmem [shape: f32[8,1], index: 4, kind: input, shape index: {}]   ;;  %s2600_s5 = inlined_call_operand.vmem [shape: f32[2,16,32], index: 5, kind: input, shape index: {}]   ;;  %s2601_s6 = inlined_call_operand.vmem [shape: f32[2,1,128], index: 6, kind: input, shape index: {}]   ;;  %s2602_s7 = inlined_call_operand.vmem [shape: bf16[2,32,32], index: 7, kind: input, shape index: {}]   ;;  %s2603_s8 = inlined_call_operand.vmem [shape: bf16[2,32,32], index: 8, kind: input, shape index: {}]   ;;  %s2604_s9 = inlined_call_operand.vmem [shape: bf16[2,32,32], index: 9, kind: input, shape index: {}]   ;;  %s2605_s10 = inlined_call_operand.vmem [shape: bf16[2,32,32], index: 10, kind: input, shape index: {}]   ;;  %s2606_s11 = inlined_call_operand.vmem [shape: bf16[2,32,128], index: 11, kind: input, shape index: {}]   ;;  %s2607_s12 = inlined_call_operand.vmem [shape: bf16[2,128,32], index: 12, kind: input, shape index: {}]   ;;  %s2608_s13 = inlined_call_operand.vmem [shape: f32[1,32], index: 13, kind: input, shape index: {}]   ;;  %s2609_s14 = inlined_call_operand.vmem [shape: f32[1,32], index: 14, kind: input, shape index: {}]   ;;  %s2610_s15 = inlined_call_operand.vmem [shape: bf16[32,32], index: 15, kind: input, shape index: {}]   ;;  %s2611_s16 = inlined_call_operand.vmem [shape: f32[1,32], index: 16, kind: input, shape index: {}]   ;;  %s2612_s17 = inlined_call_operand.vmem [shape: bf16[32,16], index: 17, kind: input, shape index: {}]   ;;  %s2613_s18 = inlined_call_operand.vmem [shape: f32[1,16], index: 18, kind: input, shape index: {}]   ;;  %s2614_s19 = inlined_call_operand.vmem [shape: bf16[16,32], index: 19, kind: input, shape index: {}]   ;;  %s2615_s20 = inlined_call_operand.vmem [shape: f32[1,32], index: 20, kind: input, shape index: {}]   ;;  %s2616_s21 = inlined_call_operand.hbm [shape: f32[2,32], index: 21, kind: output, shape index: {}]  }
   0x1   :  { %2621 = sst [smem:[#allocation9_spill]] %s2595_s0 }
   0x2   :  { %2622 = sst [smem:[#allocation10_spill]] %s2596_s1 }
   0x3   :  { %2623 = sst [smem:[#allocation11_spill]] %s2597_s2 }
   0x4   :  { %2624 = sst [smem:[#allocation12_spill]] %s2598_s3 }
   0x5   :  { %2625 = sst [smem:[#allocation13_spill]] %s2599_s4 }
   0x6   :  { %2626 = sst [smem:[#allocation14_spill]] %s2600_s5 }
   0x7   :  { %2627 = sst [smem:[#allocation15_spill]] %s2602_s7 }
   0x8   :  { %2628 = sst [smem:[#allocation16_spill]] %s2603_s8 }
   0x9   :  { %2629 = sst [smem:[#allocation17_spill]] %s2604_s9 }
   0xa   :  { %2630 = sst [smem:[#allocation18_spill]] %s2611_s16 }
   0xb   :  { %2631 = sst [smem:[#allocation19_spill]] %s2615_s20 }
   0xc   :  { %2632 = sst [smem:[#allocation20_spill]] %s2616_s21 }
   0xd   :  { %26 = vsyncpa [#allocation4], 0  ;;  %s2320_s2 = smov 0   ;;  %s2322_s25 = smov 0  }
   0xe   :  { %s2324_s26 = smov 0  }
   0xf LB: > { %2633 = sst [smem:[#allocation6_spill]] %s2201_s25  ;;  %s41_s3 = sadd.s32 1, %s2201_s25  ;;  %s2205_s26 = sphi %s2324_s26, %s32_s26   ;;  %s2201_s25 = sphi %s2322_s25, %s2653_s25   ;;  %s2197_s2 = sphi %s2320_s2, %s2652_s2  }
  0x10   : > { %2634 = sst [smem:[#allocation7_spill]] %s2205_s26  ;;  %p42_p0 = scmp.ge.s32.totalorder %s41_s3, 2 }
  0x11   : > { %p1855_p1 = scmp.ge.s32.totalorder %s2205_s26, 1  ;;  %p680_p2 = scmp.lt.s32.totalorder %s2205_s26, 3 }
  0x12   : > { %s2655_s3 = smov (%p42_p0, %s41_s3), 0 }
  0x13   : > { %2635 = sst [smem:[#allocation8_spill]] %s2655_s3  ;;  %p681_p3 = pnand %p1855_p1, %p680_p2 }
  0x14   : > { %p781_p4 = scmp.lt.s32.totalorder (!%p681_p3), %s2197_s2, 1  ;;  %s2636_s23 = sld [smem:[#allocation14_spill]] (!%p681_p3) }
  0x15   : > { %684 = sbr.rel (%p681_p3) target bundleno = 2614 (0xa36), region = 104  ;;  %s2637_s7 = sld [smem:[#allocation15_spill]] (!%p681_p3) }
  0x16   : > { %s2638_s8 = sld [smem:[#allocation16_spill]] (!%p681_p3)  ;;  %p1870_p5 = scmp.ne.s32.totalorder (!%p681_p3), %s2197_s2, 0 }
  0x17   : > { %s2639_s9 = sld [smem:[#allocation17_spill]] (!%p681_p3) }
  0x1a   : > { %s2343_s28 = scalar_select %p781_p4, %s2197_s2, 1 }
  0x1c   : > { %s2037_s29 = sshll.u32 %s2343_s28, 4  ;;  %s2043_s24 = sshll.u32 %s2343_s28, 6 }
  0x1d   : > { %s2353_s1 = scalar_lea.vmem %s2636_s23, %s2037_s29  ;;  %s2358_s3 = scalar_lea.vmem %s2637_s7, %s2037_s29 }
  0x1e   : > { %s2363_s26 = scalar_lea.vmem %s2638_s8, %s2037_s29  ;;  %s2368_s0 = scalar_lea.vmem %s2639_s9, %s2037_s29 }
  0x1f   : > { %s2373_s5 = scalar_lea.vmem %s2605_s10, %s2037_s29  ;;  %s2378_s27 = scalar_lea.vmem %s2606_s11, %s2037_s29 }
  0x20   : > { %s2384_s25 = scalar_lea.vmem %s2607_s12, %s2043_s24  ;;  %823 = sbr.rel (%p1870_p5) target bundleno = 210 (0xd2), region = 108 }
  0x21   : > { %s2640_s8 = sld [smem:[#allocation11_spill]] (!%p1870_p5) }
  0x22   : > { %s2641_s9 = sld [smem:[#allocation9_spill]] (!%p1870_p5) }
  0x23   : > { %s2642_s29 = sld [smem:[#allocation10_spill]] (!%p1870_p5) }
  0x25   : > { %vm931_vm0 = vcmask 523264   ;;  %vm966_vm1 = vcmask 261120  }
  0x27   : > { %v2053_v0 = vld [vmem:[%s2640_s8 + $0x38] sm:$0xff]  ;;  %v2052_v2 = vld [vmem:[%s2640_s8 + $0x30] sm:$0xff]  ;;  %v2051_v4 = vld [vmem:[%s2640_s8 + $0x28] sm:$0xff] }
  0x28   : > { %v2057_v1 = vld [vmem:[%s2640_s8 + $0x58] sm:$0xff]  ;;  %935 = vmatpush.bf16.msra.mxu0 %v2053_v0  ;;  %v2056_v3 = vld [vmem:[%s2640_s8 + $0x50] sm:$0xff]  ;;  %v2055_v5 = vld [vmem:[%s2640_s8 + $0x48] sm:$0xff] }
  0x29   : > { %953 = vmatpush.bf16.msra.mxu1 %v2057_v1  ;;  %v2050_v6 = vld [vmem:[%s2640_s8 + $0x20] sm:$0xff]  ;;  %v1875_v9 = vld [vmem:[%s2641_s9 + $0x8] sm:$0xf0]  ;;  %v2049_v10 = vld [vmem:[%s2640_s8 + $0x18] sm:$0xff] }
  0x2a   : > { %v2054_v7 = vld [vmem:[%s2640_s8 + $0x40] sm:$0xff]  ;;  %v2048_v12 = vld [vmem:[%s2640_s8 + $0x10] sm:$0xff]  ;;  %v2047_v13 = vld [vmem:[%s2640_s8 + $0x8] sm:$0xff] }
  0x2b   : > { %v2044_v8 = vld [vmem:[%s2641_s9 + $0x4] sm:$0xf]  ;;  %v1873_v15 = vld [vmem:[%s2641_s9] sm:$0xf]  ;;  %v2045_v16 = vld [vmem:[%s2641_s9 + $0x4] sm:$0xf0] }
  0x2c   : > { %936 = vmatpush.bf16.msra.mxu0 %v2052_v2  ;;  %v1878_v11 = vor.u32 %v2044_v8, %v1875_v9  ;;  %v2046_v14 = vld [vmem:[%s2640_s8] sm:$0xff]  ;;  %v1874_v17 = vor.u32 %v2045_v16, %v1873_v15 }
  0x2d   : > { %954 = vmatpush.bf16.msra.mxu1 %v2056_v3  ;;  %v963_v20 = vld [vmem:[%s2642_s29] sm:$0xff] }
  0x30   : > { %937 = vmatpush.bf16.msra.mxu0 %v2051_v4 }
  0x31   : > { %955 = vmatpush.bf16.msra.mxu1 %v2055_v5 }
  0x34   : > { %938 = vmatpush.bf16.msra.mxu0 %v2050_v6 }
  0x35   : > { %956 = vmatpush.bf16.msra.mxu1 %v2054_v7 }
  0x38   : > { %939 = vmatpush.bf16.msra.mxu0 %v2049_v10  ;;  %1927 = vmatmul.msk.bf16.vlgmr.msra.gmra.mxu1 %vm931_vm0, %v1878_v11 }
  0x3c   : > { %940 = vmatpush.bf16.msra.mxu0 %v2048_v12 }
  0x40   : > { %941 = vmatpush.bf16.msra.mxu0 %v2047_v13 }
  0x44   : > { %942 = vmatpush.bf16.msra.mxu0 %v2046_v14 }
  0x47   : > { %943 = vmatmul.bf16.vlgmr.msra.gmra.mxu0 %v1874_v17 }
  0xb5   : > { %v958_v18 = vpop.f32.mrf.mxu1 }
  0xbd   : > { %v960_v23 = vpop.f32.mrf.mxu1 }
  0xc4   : > { %v944_v19 = vpop.f32.mrf.mxu0 }
  0xc5   : > { %v959_v21 = vadd.f32 %v958_v18, %v944_v19 }
  0xc7   : > { %v964_v22 = vadd.f32 %v963_v20, %v959_v21 }
  0xc9   : > { %967 = vst.msk [vmem:[#allocation2] sm:$0xff] %vm966_vm1, %v964_v22 }
  0xcc   : > { %v946_v24 = vpop.f32.mrf.mxu0 }
  0xcd   : > { %v961_v25 = vadd.f32 %v960_v23, %v946_v24 }
  0xcf   : > { %v965_v26 = vadd.f32 %v963_v20, %v961_v25 }
  0xd1   : > { %968 = vst.msk [vmem:[#allocation2 + $0x8] sm:$0xff] %vm966_vm1, %v965_v26 }
  0xd2 PF: > { %v2438_v27 = vld [vmem:[#allocation2] sm:$0xff]  ;;  %vm973_vm2 = vcmask 261120   ;;  %v2207_v31 = vmov 32.0   ;;  %v2059_v48 = vld [vmem:[%s2358_s3 + $0x8] sm:$0xff]  ;;  %vm1208_vm10 = vcmask 1043456   ;;  %vm1178_vm11 = vcmask 64512   ;;  %s2644_s22 = scalar_lea.vmem %s2601_s6, %s2343_s28 }
  0xd3   : > { %v974_v28 = vsel %vm973_vm2, %v2438_v27, 0.0  ;;  %2116 = vrcp.f32 %v2207_v31  ;;  %v2061_v49 = vld [vmem:[%s2363_s26 + $0x8] sm:$0xff]  ;;  %1058 = vmatpush.bf16.msra.mxu0 %v2059_v48  ;;  %v2058_v51 = vld [vmem:[%s2358_s3] sm:$0xff]  ;;  %p2009_p6 = scmp.ne.s32.totalorder %s2197_s2, 1 }
  0xd4   : > { %975 = vadd.xlane.f32.xlu0 %v974_v28  ;;  %1089 = vmatpush.bf16.msra.mxu2 %v2061_v49  ;;  %v2060_v52 = vld [vmem:[%s2363_s26] sm:$0xff]  ;;  %v2063_v55 = vld [vmem:[%s2368_s0 + $0x8] sm:$0xff]  ;;  %s2647_s23 = sld [smem:[#allocation19_spill]] (!%p2009_p6) }
  0xd5   : > { %v2062_v58 = vld [vmem:[%s2368_s0] sm:$0xff]  ;;  %s2643_s0 = sld [smem:[#allocation12_spill]] }
  0xd6   : > { %v2463_v7 = vld [vmem:[%s2353_s1] sm:$0xff] }
  0xd7   : > { %1059 = vmatpush.bf16.msra.mxu0 %v2058_v51  ;;  %v1025_v10 = vperm.slane %v2463_v7, 0  ;;  %v1028_v15 = vperm.slane %v2463_v7, 1  ;;  %v1070_v20 = vperm.slane %v2463_v7, 5  ;;  %v1036_v24 = vperm.slane %v2463_v7, 4 }
  0xd8   : > { %v2442_v29 = vld [vmem:[#allocation2 + $0x8] sm:$0xff]  ;;  %1090 = vmatpush.bf16.msra.mxu2 %v2060_v52 }
  0xd9   : > { %v977_v30 = vsel %vm973_vm2, %v2442_v29, 0.0  ;;  %v2117_v32 = vpop.eup %2116 }
  0xda   : > { %v981_v33 = vmul.f32 32.0, %v2117_v32  ;;  %vm985_vm3 = vweird.f32 %v2117_v32 }
  0xdb   : > { %v2114_v51 = vld [vmem:[%s2643_s0] ss:$0 sm:$0xff] }
  0xdc   : > { %978 = vadd.xlane.f32.xlu0 %v977_v30  ;;  %v982_v34 = vsub.f32 1.0, %v981_v33  ;;  %1120 = vmatpush.bf16.msrb.mxu2 %v2063_v55 }
  0xde   : > { %v983_v35 = vmul.f32 %v2117_v32, %v982_v34 }
  0xe0   : > { %v984_v36 = vadd.f32 %v2117_v32, %v983_v35  ;;  %1121 = vmatpush.bf16.msrb.mxu2 %v2062_v58 }
  0xe2   : > { %v2446_v37 = vsel %vm985_vm3, %v2117_v32, %v984_v36  ;;  %v1101_v36 = vperm.slane %v2463_v7, 6 }
 0x147   : > { %v976_v38 = vpop.xlane.xlu0 %975 }
 0x148   : > { %v987_v39 = vmul.f32 %v2446_v37, %v976_v38 }
 0x14a   : > { %v989_v40 = vsub.f32 %v2438_v27, %v987_v39 }
 0x14c   : > { %v991_v41 = vmul.f32 %v989_v40, %v989_v40 }
 0x14e   : > { %v993_v42 = vsel %vm973_vm2, %v991_v41, 0.0 }
 0x14f   : > { %994 = vadd.xlane.f32.xlu1 %v993_v42  ;;  %v979_v43 = vpop.xlane.xlu0 %978 }
 0x150   : > { %v988_v44 = vmul.f32 %v2446_v37, %v979_v43 }
 0x152   : > { %v990_v45 = vsub.f32 %v2442_v29, %v988_v44 }
 0x154   : > { %v992_v46 = vmul.f32 %v990_v45, %v990_v45 }
 0x156   : > { %v996_v47 = vsel %vm973_vm2, %v992_v46, 0.0 }
 0x157   : > { %997 = vadd.xlane.f32.xlu1 %v996_v47 }
 0x1c2   : > { %v995_v50 = vpop.xlane.xlu1 %994 }
 0x1c3   : > { %v999_v53 = vmul.f32 %v995_v50, %v2446_v37 }
 0x1c5   : > { %v1001_v54 = vadd.f32 1e-12, %v999_v53 }
 0x1c7   : > { %2118 = vrsqrt.f32 %v1001_v54  ;;  %vm1009_vm5 = vweird.f32 %v1001_v54 }
 0x1ca   : > { %v998_v56 = vpop.xlane.xlu1 %997 }
 0x1cb   : > { %v1000_v57 = vmul.f32 %v998_v56, %v2446_v37 }
 0x1cd   : > { %v2119_v59 = vpop.eup %2118  ;;  %v1002_v60 = vadd.f32 1e-12, %v1000_v57 }
 0x1ce   : > { %v1004_v61 = vmul.f32 %v2119_v59, %v1001_v54  ;;  %vm1010_vm4 = vweird.f32 %v2119_v59 }
 0x1cf   : > { %2120 = vrsqrt.f32 %v1002_v60  ;;  %vm1011_vm6 = vmor %vm1009_vm5, %vm1010_vm4  ;;  %vm1019_vm8 = vweird.f32 %v1002_v60 }
 0x1d0   : > { %v1005_v62 = vmul.f32 %v2119_v59, %v1004_v61 }
 0x1d2   : > { %v1006_v63 = vmul.f32 0.5, %v1005_v62 }
 0x1d4   : > { %v1007_v0 = vsub.f32 1.5, %v1006_v63 }
 0x1d5   : > { %v2121_v1 = vpop.eup %2120 }
 0x1d6   : > { %v1008_v2 = vmul.f32 %v2119_v59, %v1007_v0  ;;  %v1014_v3 = vmul.f32 %v2121_v1, %v1002_v60  ;;  %vm1020_vm7 = vweird.f32 %v2121_v1 }
 0x1d7   : > { %vm1021_vm9 = vmor %vm1019_vm8, %vm1020_vm7 }
 0x1d8   : > { %v1015_v4 = vmul.f32 %v2121_v1, %v1014_v3  ;;  %v1012_v5 = vsel %vm1011_vm6, %v2119_v59, %v1008_v2 }
 0x1d9   : > { %v1023_v9 = vmul.f32 %v1012_v5, %v989_v40  ;;  %v2065_v5 = vld [vmem:[%s2373_s5 + $0x8] sm:$0xff] }
 0x1da   : > { %v1016_v6 = vmul.f32 0.5, %v1015_v4 }
 0x1db   : > { %v1026_v14 = vmul.f32 %v1025_v10, %v1023_v9 }
 0x1dc   : > { %v1017_v8 = vsub.f32 1.5, %v1016_v6 }
 0x1dd   : > { %v1029_v17 = vadd.f32 %v1028_v15, %v1026_v14 }
 0x1de   : > { %v1018_v11 = vmul.f32 %v2121_v1, %v1017_v8 }
 0x1e0   : > { %v1022_v12 = vsel %vm1021_vm9, %v2121_v1, %v1018_v11 }
 0x1e1   : > { %v1024_v13 = vmul.f32 %v1022_v12, %v990_v45 }
 0x1e3   : > { %v1027_v16 = vmul.f32 %v1025_v10, %v1024_v13 }
 0x1e5   : > { %v1030_v18 = vadd.f32 %v1028_v15, %v1027_v16  ;;  %v2064_v15 = vld [vmem:[%s2373_s5] sm:$0xff]  ;;  %s2645_s5 = sld [smem:[#allocation13_spill]] (!%p2009_p6) }
 0x1e7   : > { %v1031_v19 = vpack.c.bf16 %v1030_v18, %v1029_v17 }
 0x1e9   : > { %1936 = vmatmul.msk.bf16.vlgmr.msra.gmra.mxu0 %vm973_vm2, %v1031_v19  ;;  %1945 = vmatmul.msk.bf16.vlgmr.msra.gmra.mxu2 %vm973_vm2, %v1031_v19 }
 0x1f9   : > { %1954 = vmatmul.msk.bf16.vlgmr.msrb.gmra.mxu2 %vm973_vm2, %v1031_v19 }
 0x266   : > { %v1061_v23 = vpop.f32.mrf.mxu0 }
 0x267   : > { %v1062_v28 = vadd.f32 %v1061_v23, %v1036_v24 }
 0x269   : > { %v1128_v32 = vpack.c.bf16 %v1062_v28, %v1062_v28 }
 0x26c   : > { %v1092_v21 = vpop.f32.mrf.mxu2 }
 0x26d   : > { %v1093_v22 = vadd.f32 %v1092_v21, %v1070_v20  ;;  %v1249_v21 = vperm.slane %v2463_v7, 7 }
 0x26e   : > { %v1063_v34 = vpop.f32.mrf.mxu0 }
 0x26f   : > { %v1130_v25 = vpack.c.bf16 %v1093_v22, %v1093_v22  ;;  %v1064_v38 = vadd.f32 %v1063_v34, %v1036_v24 }
 0x271   : > { %v1136_v26 = vsel %vm973_vm2, %v1130_v25, 0  ;;  %v1129_v41 = vpack.c.bf16 %v1064_v38, %v1064_v38 }
 0x272   : > { %1145 = vmatpush.bf16.xpose.msra.mxu3 %v1136_v26 }
 0x274   : > { %v1094_v30 = vpop.f32.mrf.mxu2 }
 0x275   : > { %v1095_v31 = vadd.f32 %v1094_v30, %v1070_v20 }
 0x277   : > { %v1131_v33 = vpack.c.bf16 %v1095_v31, %v1095_v31 }
 0x279   : > { %1955 = vmatmul.msk.bf16.vlgmr.msra.gmra.mxu3 %vm973_vm2, %v1128_v32  ;;  %v1155_v35 = vsel %vm973_vm2, %v1131_v33, 0 }
 0x27a   : > { %1164 = vmatpush.bf16.xpose.msrb.mxu0 %v1155_v35  ;;  %1271 = vmatpush.bf16.msrb.mxu3 %v2065_v5 }
 0x27c   : > { %v1123_v39 = vpop.f32.mrf.mxu2 }
 0x27d   : > { %v1124_v40 = vadd.f32 %v1123_v39, %v1101_v36 }
 0x27e   : > { %1272 = vmatpush.bf16.msrb.mxu3 %v2064_v15  ;;  %v2115_v15 = vld [vmem:[%s2644_s22] ss:$0 sm:$0xff] }
 0x27f   : > { %v1203_v42 = vpack.c.bf16 %v1124_v40, %v1124_v40 }
 0x281   : > { %1956 = vmatmul.msk.bf16.vlgmr.msrb.gmra.mxu0 %vm973_vm2, %v1129_v41  ;;  %v1210_v43 = vsel %vm1208_vm10, %v1203_v42, 0  ;;  %v2067_v41 = vld [vmem:[%s2378_s27 + $0x8] sm:$0xff] }
 0x282   : > { %1219 = vmatpush.bf16.msra.mxu1 %v1210_v43  ;;  %1361 = vmatpush.bf16.msra.mxu0 %v2067_v41 }
 0x284   : > { %v1125_v44 = vpop.f32.mrf.mxu2 }
 0x285   : > { %v1126_v45 = vadd.f32 %v1125_v44, %v1101_v36  ;;  %v2066_v44 = vld [vmem:[%s2378_s27] sm:$0xff] }
 0x286   : > { %1362 = vmatpush.bf16.msra.mxu0 %v2066_v44 }
 0x287   : > { %v1204_v46 = vpack.c.bf16 %v1126_v45, %v1126_v45 }
 0x289   : > { %v1229_v47 = vsel %vm1208_vm10, %v1204_v46, 0 }
 0x28a   : > { %1238 = vmatpush.bf16.msra.mxu2 %v1229_v47 }
 0x2fc   : > { %v1147_v48 = vpop.f32.mrf.mxu3 }
 0x2fd   : > { %v1170_v53 = vmul.f32 0.17677669, %v1147_v48 }
 0x2fe   : > { %v1166_v49 = vpop.f32.mrf.mxu0 }
 0x2ff   : > { %v1171_v50 = vmul.f32 0.17677669, %v1166_v49  ;;  %v1176_v57 = vadd.f32 %v2114_v51, %v1170_v53 }
 0x301   : > { %v1177_v52 = vadd.f32 %v2114_v51, %v1171_v50  ;;  %v1179_v58 = vsel %vm1178_vm11, %v1176_v57, -inf }
 0x303   : > { %v1182_v54 = vsel %vm1178_vm11, %v1177_v52, -inf }
 0x304   : > { %1183 = vmax.xlane.f32.xlu2 %v1182_v54  ;;  %v1149_v55 = vpop.f32.mrf.mxu3 }
 0x306   : > { %v1168_v56 = vpop.f32.mrf.mxu0 }
 0x30c   : > { %1180 = vmax.xlane.f32.xlu2 %v1179_v58 }
 0x377   : > { %v1184_v59 = vpop.xlane.xlu2 %1183 }
 0x378   : > { %v1186_v60 = vsub.f32 %v1177_v52, %v1184_v59 }
 0x37a   : > { %v1189_v61 = vmul.f32 1.442695, %v1186_v60 }
 0x37c   : > { %2122 = vpow2.f32 %v1189_v61  ;;  %v1325_v61 = vperm.slane %v2463_v7, 2 }
 0x37f   : > { %v1181_v62 = vpop.xlane.xlu2 %1180 }
 0x380   : > { %v1185_v63 = vsub.f32 %v1176_v57, %v1181_v62 }
 0x382   : > { %v2123_v0 = vpop.eup %2122  ;;  %v1187_v1 = vmul.f32 1.442695, %v1185_v63 }
 0x383   : > { %v1194_v2 = vsel %vm1178_vm11, %v2123_v0, 0.0 }
 0x384   : > { %2124 = vpow2.f32 %v1187_v1  ;;  %1195 = vadd.xlane.f32.xlu0 %v1194_v2  ;;  %v1328_v1 = vperm.slane %v2463_v7, 3  ;;  %v2072_v7 = vld [vmem:[%s2384_s25 + $0x20] sm:$0xff] }
 0x38a   : > { %v2125_v3 = vpop.eup %2124 }
 0x38b   : > { %v1191_v4 = vsel %vm1178_vm11, %v2125_v3, 0.0 }
 0x38c   : > { %1192 = vadd.xlane.f32.xlu1 %v1191_v4 }
 0x3f7   : > { %v1196_v6 = vpop.xlane.xlu0 %1195 }
 0x3f8   : > { %2126 = vrcp.f32 %v1196_v6 }
 0x3fe   : > { %v2127_v8 = vpop.eup %2126 }
 0x3ff   : > { %v1200_v9 = vmul.f32 %v2127_v8, %v2123_v0  ;;  %v1193_v10 = vpop.xlane.xlu1 %1192 }
 0x400   : > { %2128 = vrcp.f32 %v1193_v10  ;;  %v2074_v10 = vld [vmem:[%s2384_s25 + $0x30] sm:$0xff] }
 0x401   : > { %v1202_v11 = vpack.c.bf16 %v1200_v9, %v1200_v9  ;;  %v2075_v9 = vld [vmem:[%s2384_s25 + $0x38] sm:$0xff] }
 0x402   : > { %1453 = vmatpush.bf16.msrb.mxu1 %v2075_v9 }
 0x403   : > { %1958 = vmatmul.msk.bf16.vlgmr.msra.gmra.mxu2 %vm1178_vm11, %v1202_v11  ;;  %v2073_v11 = vld [vmem:[%s2384_s25 + $0x28] sm:$0xff] }
 0x406   : > { %v2129_v12 = vpop.eup %2128  ;;  %1454 = vmatpush.bf16.msrb.mxu1 %v2074_v10 }
 0x407   : > { %v1199_v13 = vmul.f32 %v2129_v12, %v2125_v3  ;;  %v2071_v12 = vld [vmem:[%s2384_s25 + $0x18] sm:$0xff] }
 0x409   : > { %v1201_v14 = vpack.c.bf16 %v1199_v13, %v1199_v13  ;;  %v2070_v13 = vld [vmem:[%s2384_s25 + $0x10] sm:$0xff] }
 0x40a   : > { %1455 = vmatpush.bf16.msrb.mxu1 %v2073_v11 }
 0x40b   : > { %1957 = vmatmul.msk.bf16.vlgmr.msra.gmra.mxu1 %vm1178_vm11, %v1201_v14  ;;  %v2069_v14 = vld [vmem:[%s2384_s25 + $0x8] sm:$0xff] }
 0x40e   : > { %1456 = vmatpush.bf16.msrb.mxu1 %v2072_v7 }
 0x412   : > { %1457 = vmatpush.bf16.msrb.mxu1 %v2071_v12 }
 0x416   : > { %1458 = vmatpush.bf16.msrb.mxu1 %v2070_v13 }
 0x41a   : > { %1459 = vmatpush.bf16.msrb.mxu1 %v2069_v14 }
 0x486   : > { %v1240_v16 = vpop.f32.mrf.mxu2 }
 0x488   : > { %v1221_v17 = vpop.f32.mrf.mxu1 }
 0x489   : > { %v1244_v18 = vpack.c.bf16 %v1240_v16, %v1221_v17  ;;  %v2068_v16 = vld [vmem:[%s2384_s25] sm:$0xff] }
 0x48a   : > { %1460 = vmatpush.bf16.msrb.mxu1 %v2068_v16 }
 0x48b   : > { %1967 = vmatmul.msk.bf16.vlgmr.msrb.gmra.mxu3 %vm973_vm2, %v1244_v18 }
 0x48e   : > { %v1242_v19 = vpop.f32.mrf.mxu2 }
 0x490   : > { %v1223_v20 = vpop.f32.mrf.mxu1 }
 0x50e   : > { %v1274_v22 = vpop.f32.mrf.mxu3 }
 0x50f   : > { %v1275_v23 = vadd.f32 %v1274_v22, %v1249_v21 }
 0x511   : > { %v2491_v24 = vadd.f32 %v1275_v23, %v2438_v27 }
 0x513   : > { %v1281_v25 = vsel %vm973_vm2, %v2491_v24, 0.0 }
 0x514   : > { %1282 = vadd.xlane.f32.xlu2 %v1281_v25 }
 0x516   : > { %v1276_v26 = vpop.f32.mrf.mxu3 }
 0x517   : > { %v1277_v28 = vadd.f32 %v1276_v26, %v1249_v21 }
 0x519   : > { %v2496_v30 = vadd.f32 %v1277_v28, %v2442_v29 }
 0x51b   : > { %v1284_v31 = vsel %vm973_vm2, %v2496_v30, 0.0 }
 0x51c   : > { %1285 = vadd.xlane.f32.xlu0 %v1284_v31 }
 0x587   : > { %v1283_v32 = vpop.xlane.xlu2 %1282 }
 0x588   : > { %v1287_v33 = vmul.f32 %v1283_v32, %v2446_v37 }
 0x58a   : > { %v1289_v27 = vsub.f32 %v2491_v24, %v1287_v33 }
 0x58c   : > { %v1291_v34 = vmul.f32 %v1289_v27, %v1289_v27 }
 0x58e   : > { %v1293_v35 = vsel %vm973_vm2, %v1291_v34, 0.0 }
 0x58f   : > { %v1286_v36 = vpop.xlane.xlu0 %1285  ;;  %1294 = vadd.xlane.f32.xlu1 %v1293_v35 }
 0x590   : > { %v1288_v38 = vmul.f32 %v1286_v36, %v2446_v37 }
 0x592   : > { %v1290_v29 = vsub.f32 %v2496_v30, %v1288_v38 }
 0x594   : > { %v1292_v39 = vmul.f32 %v1290_v29, %v1290_v29 }
 0x596   : > { %v1296_v40 = vsel %vm973_vm2, %v1292_v39, 0.0 }
 0x597   : > { %1297 = vadd.xlane.f32.xlu2 %v1296_v40 }
 0x602   : > { %v1295_v42 = vpop.xlane.xlu1 %1294 }
 0x603   : > { %v1299_v43 = vmul.f32 %v1295_v42, %v2446_v37 }
 0x605   : > { %v1301_v45 = vadd.f32 1e-12, %v1299_v43  ;;  %v972_v43 = vld [vmem:[%s2353_s1 + $0x8] sm:$0xff]  ;;  %s2646_s1 = sld [smem:[#allocation18_spill]] (!%p2009_p6) }
 0x606   : > { %v1404_v44 = vperm.slane %v972_v43, 0 }
 0x607   : > { %2130 = vrsqrt.f32 %v1301_v45  ;;  %vm1309_vm13 = vweird.f32 %v1301_v45 }
 0x60a   : > { %v1298_v46 = vpop.xlane.xlu2 %1297 }
 0x60b   : > { %v1300_v47 = vmul.f32 %v1298_v46, %v2446_v37 }
 0x60d   : > { %v2131_v48 = vpop.eup %2130  ;;  %v1302_v49 = vadd.f32 1e-12, %v1300_v47 }
 0x60e   : > { %v1304_v50 = vmul.f32 %v2131_v48, %v1301_v45  ;;  %vm1310_vm12 = vweird.f32 %v2131_v48 }
 0x60f   : > { %2132 = vrsqrt.f32 %v1302_v49  ;;  %vm1311_vm14 = vmor %vm1309_vm13, %vm1310_vm12  ;;  %vm1319_vm0 = vweird.f32 %v1302_v49 }
 0x610   : > { %v1305_v51 = vmul.f32 %v2131_v48, %v1304_v50 }
 0x612   : > { %v1306_v52 = vmul.f32 0.5, %v1305_v51 }
 0x614   : > { %v1307_v53 = vsub.f32 1.5, %v1306_v52 }
 0x615   : > { %v2133_v54 = vpop.eup %2132 }
 0x616   : > { %v1308_v55 = vmul.f32 %v2131_v48, %v1307_v53  ;;  %v1314_v56 = vmul.f32 %v2133_v54, %v1302_v49  ;;  %vm1320_vm15 = vweird.f32 %v2133_v54 }
 0x617   : > { %vm1321_vm1 = vmor %vm1319_vm0, %vm1320_vm15 }
 0x618   : > { %v1315_v57 = vmul.f32 %v2133_v54, %v1314_v56  ;;  %v1312_v58 = vsel %vm1311_vm14, %v2131_v48, %v1308_v55 }
 0x619   : > { %v1323_v62 = vmul.f32 %v1312_v58, %v1289_v27 }
 0x61a   : > { %v1316_v59 = vmul.f32 0.5, %v1315_v57 }
 0x61b   : > { %v1326_v2 = vmul.f32 %v1325_v61, %v1323_v62 }
 0x61c   : > { %v1317_v60 = vsub.f32 1.5, %v1316_v59 }
 0x61d   : > { %v1329_v5 = vadd.f32 %v1328_v1, %v1326_v2 }
 0x61e   : > { %v1318_v63 = vmul.f32 %v2133_v54, %v1317_v60 }
 0x620   : > { %v1322_v0 = vsel %vm1321_vm1, %v2133_v54, %v1318_v63 }
 0x621   : > { %v1324_v3 = vmul.f32 %v1322_v0, %v1290_v29 }
 0x623   : > { %v1327_v4 = vmul.f32 %v1325_v61, %v1324_v3 }
 0x625   : > { %v1330_v6 = vadd.f32 %v1328_v1, %v1327_v4 }
 0x627   : > { %v1331_v8 = vpack.c.bf16 %v1330_v6, %v1329_v5 }
 0x629   : > { %1976 = vmatmul.msk.bf16.vlgmr.msra.gmra.mxu0 %vm973_vm2, %v1331_v8 }
 0x6a6   : > { %v1364_v17 = vpop.f32.mrf.mxu0 }
 0x6a7   : > { %v1365_v18 = vadd.f32 %v2115_v15, %v1364_v17 }
 0x6a9   : > { %v1369_v19 = vmul.f32 %v1365_v18, %v1365_v18 }
 0x6ab   : > { %v1371_v20 = vmul.f32 %v1369_v19, %v1365_v18 }
 0x6ad   : > { %v1373_v21 = vmul.f32 0.044715, %v1371_v20 }
 0x6ae   : > { %v1366_v22 = vpop.f32.mrf.mxu0 }
 0x6af   : > { %v1375_v23 = vadd.f32 %v1373_v21, %v1365_v18  ;;  %v1367_v25 = vadd.f32 %v2115_v15, %v1366_v22 }
 0x6b1   : > { %v1377_v26 = vmul.f32 0.7978846, %v1375_v23  ;;  %v1370_v28 = vmul.f32 %v1367_v25, %v1367_v25 }
 0x6b3   : > { %v1372_v31 = vmul.f32 %v1370_v28, %v1367_v25  ;;  %2134 = vtanh.f32 %v1377_v26 }
 0x6b5   : > { %v1374_v32 = vmul.f32 0.044715, %v1372_v31 }
 0x6b7   : > { %v1376_v33 = vadd.f32 %v1374_v32, %v1367_v25 }
 0x6b9   : > { %v1378_v27 = vmul.f32 0.7978846, %v1376_v33  ;;  %v2135_v34 = vpop.eup %2134 }
 0x6ba   : > { %v1381_v35 = vadd.f32 1.0, %v2135_v34 }
 0x6bb   : > { %2136 = vtanh.f32 %v1378_v27 }
 0x6bc   : > { %v1383_v29 = vmul.f32 0.5, %v1381_v35 }
 0x6be   : > { %v1385_v40 = vmul.f32 %v1383_v29, %v1365_v18 }
 0x6c1   : > { %v2137_v36 = vpop.eup %2136 }
 0x6c2   : > { %v1382_v38 = vadd.f32 1.0, %v2137_v36 }
 0x6c4   : > { %v1384_v39 = vmul.f32 0.5, %v1382_v38 }
 0x6c6   : > { %v1386_v41 = vmul.f32 %v1384_v39, %v1367_v25 }
 0x6c8   : > { %v1387_v42 = vpack.c.bf16 %v1386_v41, %v1385_v40 }
 0x6ca   : > { %1461 = vmatmul.bf16.vlgmr.msrb.gmra.mxu1 %v1387_v42 }
 0x747   : > { %v1462_v45 = vpop.f32.mrf.mxu1 }
 0x748   : > { %v1463_v46 = vadd.f32 %v1462_v45, %v1404_v44 }
 0x74a   : > { %v1467_v47 = vadd.f32 %v1463_v46, %v2491_v24 }
 0x74c   : > { %1469 = vst.msk [vmem:[#allocation2] sm:$0xff] %vm973_vm2, %v1467_v47 }
 0x74f   : > { %v1464_v48 = vpop.f32.mrf.mxu1 }
 0x750   : > { %v1465_v49 = vadd.f32 %v1464_v48, %v1404_v44  ;;  %1474 = sbr.rel (%p2009_p6) target bundleno = 2602 (0xa2a), region = 112 }
 0x752   : > { %v1468_v50 = vadd.f32 %v1465_v49, %v2496_v30 }
 0x754   : > { %1470 = vst.msk [vmem:[#allocation2 + $0x8] sm:$0xff] %vm973_vm2, %v1468_v50 }
 0x755   : > { %v1477_v51 = vsel %vm973_vm2, %v1467_v47, 0.0  ;;  %v1480_v52 = vsel %vm973_vm2, %v1468_v50, 0.0  ;;  %v2077_v61 = vld [vmem:[%s2610_s15 + $0x8] sm:$0xff]  ;;  %v2076_v0 = vld [vmem:[%s2610_s15] sm:$0xff]  ;;  %v2208_v34 = vmov 0   ;;  %vm1618_vm9 = vcmask 130048  }
 0x756   : > { %1478 = vadd.xlane.f32.xlu0 %v1477_v51  ;;  %v2079_v62 = vld [vmem:[%s2612_s17 + $0x8] sm:$0xff]  ;;  %1561 = vmatpush.bf16.msra.mxu0 %v2077_v61  ;;  %v2078_v1 = vld [vmem:[%s2612_s17] sm:$0xff]  ;;  %vm1664_vm10 = vcmask 1041409   ;;  %vm1667_vm11 = vcmask 254976  }
 0x757   : > { %1595 = vmatpush.bf16.msra.mxu1 %v2079_v62  ;;  %v2141_v25 = vld [vmem:[%s2609_s14] ss:$0 sm:$0xff]  ;;  %2138 = vset.pattern.permute.xlu2 %v2208_v34 }
 0x758   : > { %v2080_v33 = vld [vmem:[%s2614_s19] sm:$0xff]  ;;  %2139 = vset.pattern.permute.xlu0 %v2208_v34 }
 0x759   : > { %1629 = vmatpush.bf16.msra.mxu2 %v2080_v33  ;;  %v1638_v27 = vld [vmem:[%s2645_s5] sm:$0xff] }
 0x75a   : > { %1562 = vmatpush.bf16.msra.mxu0 %v2076_v0  ;;  %1641 = vperm.xlu2 %2138, %v1638_v27   ;;  %v2143_v36 = vld [vmem:[%s2613_s18] ss:$0 sm:$0xff] }
 0x75b   : > { %1596 = vmatpush.bf16.msra.mxu1 %v2078_v1  ;;  %v2142_v44 = vld [vmem:[%s2646_s1] ss:$0 sm:$0xff] }
 0x75c   : > { %v2144_v45 = vld [vmem:[%s2647_s23] ss:$0 sm:$0xff] }
 0x75e   : > { %1481 = vadd.xlane.f32.xlu0 %v1480_v52 }
 0x7b4   : > { %v1642_v49 = vpop.permute.xlu2 %1641 }
 0x7c9   : > { %v1479_v53 = vpop.xlane.xlu0 %1478 }
 0x7ca   : > { %v1483_v24 = vmul.f32 %v1479_v53, %v2446_v37 }
 0x7cc   : > { %v1485_v54 = vsub.f32 %v1467_v47, %v1483_v24 }
 0x7ce   : > { %v1487_v55 = vmul.f32 %v1485_v54, %v1485_v54 }
 0x7d0   : > { %v1489_v56 = vsel %vm973_vm2, %v1487_v55, 0.0 }
 0x7d1   : > { %1490 = vadd.xlane.f32.xlu1 %v1489_v56  ;;  %v1482_v30 = vpop.xlane.xlu0 %1481 }
 0x7d2   : > { %v1484_v57 = vmul.f32 %v1482_v30, %v2446_v37 }
 0x7d4   : > { %v1486_v58 = vsub.f32 %v1468_v50, %v1484_v57 }
 0x7d6   : > { %v1488_v59 = vmul.f32 %v1486_v58, %v1486_v58 }
 0x7d8   : > { %v1492_v60 = vsel %vm973_vm2, %v1488_v59, 0.0 }
 0x7d9   : > { %1493 = vadd.xlane.f32.xlu1 %v1492_v60 }
 0x844   : > { %v1491_v63 = vpop.xlane.xlu1 %1490 }
 0x845   : > { %v1495_v2 = vmul.f32 %v1491_v63, %v2446_v37 }
 0x847   : > { %v1497_v3 = vadd.f32 1e-12, %v1495_v2 }
 0x849   : > { %2145 = vrsqrt.f32 %v1497_v3  ;;  %vm1505_vm4 = vweird.f32 %v1497_v3 }
 0x84c   : > { %v1494_v4 = vpop.xlane.xlu1 %1493 }
 0x84d   : > { %v1496_v5 = vmul.f32 %v1494_v4, %v2446_v37  ;;  %v2140_v37 = vld [vmem:[%s2608_s13] ss:$0 sm:$0xff] }
 0x84f   : > { %v2146_v6 = vpop.eup %2145  ;;  %v1498_v8 = vadd.f32 1e-12, %v1496_v5 }
 0x850   : > { %v1500_v9 = vmul.f32 %v2146_v6, %v1497_v3  ;;  %vm1506_vm3 = vweird.f32 %v2146_v6 }
 0x851   : > { %2147 = vrsqrt.f32 %v1498_v8  ;;  %vm1507_vm5 = vmor %vm1505_vm4, %vm1506_vm3  ;;  %vm1515_vm7 = vweird.f32 %v1498_v8 }
 0x852   : > { %v1501_v10 = vmul.f32 %v2146_v6, %v1500_v9 }
 0x854   : > { %v1502_v11 = vmul.f32 0.5, %v1501_v10 }
 0x856   : > { %v1503_v7 = vsub.f32 1.5, %v1502_v11 }
 0x857   : > { %v2148_v12 = vpop.eup %2147 }
 0x858   : > { %v1504_v13 = vmul.f32 %v2146_v6, %v1503_v7  ;;  %v1510_v14 = vmul.f32 %v2148_v12, %v1498_v8  ;;  %vm1516_vm6 = vweird.f32 %v2148_v12 }
 0x859   : > { %vm1517_vm8 = vmor %vm1515_vm7, %vm1516_vm6 }
 0x85a   : > { %v1511_v15 = vmul.f32 %v2148_v12, %v1510_v14  ;;  %v1508_v17 = vsel %vm1507_vm5, %v2146_v6, %v1504_v13 }
 0x85b   : > { %v1519_v19 = vmul.f32 %v1508_v17, %v1485_v54 }
 0x85c   : > { %v1512_v16 = vmul.f32 0.5, %v1511_v15 }
 0x85d   : > { %v1524_v23 = vmul.f32 %v2140_v37, %v1519_v19 }
 0x85e   : > { %v1513_v18 = vsub.f32 1.5, %v1512_v16 }
 0x85f   : > { %v1529_v28 = vadd.f32 %v2141_v25, %v1524_v23 }
 0x860   : > { %v1514_v20 = vmul.f32 %v2148_v12, %v1513_v18 }
 0x862   : > { %v1518_v21 = vsel %vm1517_vm8, %v2148_v12, %v1514_v20 }
 0x863   : > { %v1520_v22 = vmul.f32 %v1518_v21, %v1486_v58 }
 0x865   : > { %v1525_v26 = vmul.f32 %v2140_v37, %v1520_v22 }
 0x867   : > { %v1530_v31 = vadd.f32 %v2141_v25, %v1525_v26 }
 0x869   : > { %v1531_v32 = vpack.c.bf16 %v1530_v31, %v1529_v28 }
 0x86b   : > { %2018 = vmatmul.msk.bf16.vlgmr.msra.gmra.mxu0 %vm973_vm2, %v1531_v32  ;;  %2027 = vmatmul.msk.bf16.vlgmr.msra.gmra.mxu1 %vm973_vm2, %v1531_v32 }
 0x8e8   : > { %v1598_v35 = vpop.f32.mrf.mxu1  ;;  %v1564_v43 = vpop.f32.mrf.mxu0 }
 0x8e9   : > { %v1599_v38 = vadd.f32 %v2143_v36, %v1598_v35  ;;  %v1565_v47 = vadd.f32 %v2142_v44, %v1564_v43 }
 0x8eb   : > { %v1603_v40 = vmax.f32 %v1599_v38, 0.0 }
 0x8f0   : > { %v1600_v29 = vpop.f32.mrf.mxu1  ;;  %v1566_v52 = vpop.f32.mrf.mxu0 }
 0x8f1   : > { %v1601_v39 = vadd.f32 %v2143_v36, %v1600_v29  ;;  %v1567_v55 = vadd.f32 %v2142_v44, %v1566_v52 }
 0x8f3   : > { %v1604_v41 = vmax.f32 %v1601_v39, 0.0 }
 0x8f5   : > { %v1605_v42 = vpack.c.bf16 %v1604_v41, %v1603_v40 }
 0x8f7   : > { %2032 = vmatmul.msk.bf16.vlgmr.msra.gmra.mxu2 %vm1618_vm9, %v1605_v42 }
 0x97a   : > { %v1631_v46 = vpop.f32.mrf.mxu2 }
 0x97b   : > { %v1632_v48 = vadd.f32 %v2144_v45, %v1631_v46 }
 0x97d   : > { %v1636_v50 = vadd.f32 %v1632_v48, %v1565_v47 }
 0x97f   : > { %v1644_v51 = vmul.f32 %v1642_v49, %v1636_v50 }
 0x981   : > { %v1646_v53 = vsel %vm973_vm2, %v1644_v51, 0.0 }
 0x982   : > { %v1647_v24 = vrot.slane %v1646_v53, 4  ;;  %v1633_v54 = vpop.f32.mrf.mxu2 }
 0x983   : > { %v1634_v56 = vadd.f32 %v2144_v45, %v1633_v54 }
 0x984   : > { %v1648_v30 = vadd.f32 %v1647_v24, %v1646_v53 }
 0x985   : > { %v1637_v57 = vadd.f32 %v1634_v56, %v1567_v55 }
 0x986   : > { %v1649_v58 = vrot.slane %v1648_v30, 2 }
 0x987   : > { %v1645_v59 = vmul.f32 %v1642_v49, %v1637_v57 }
 0x988   : > { %v1650_v61 = vadd.f32 %v1649_v58, %v1648_v30 }
 0x989   : > { %v1653_v60 = vsel %vm973_vm2, %v1645_v59, 0.0 }
 0x98a   : > { %v1654_v62 = vrot.slane %v1653_v60, 4  ;;  %v1651_v0 = vrot.slane %v1650_v61, 1 }
 0x98c   : > { %v1655_v63 = vadd.f32 %v1654_v62, %v1653_v60  ;;  %v1652_v3 = vadd.f32 %v1651_v0, %v1650_v61 }
 0x98e   : > { %v1656_v1 = vrot.slane %v1655_v63, 2  ;;  %v1660_v6 = vmul.f32 %v1652_v3, %v1652_v3 }
 0x990   : > { %v1657_v2 = vadd.f32 %v1656_v1, %v1655_v63 }
 0x992   : > { %v1658_v4 = vrot.slane %v1657_v2, 1 }
 0x994   : > { %v1659_v5 = vadd.f32 %v1658_v4, %v1657_v2 }
 0x996   : > { %v1661_v8 = vmul.f32 %v1659_v5, %v1659_v5 }
 0x998   : > { %v1665_v9 = vsel %vm1664_vm10, %v1661_v8, %v1660_v6 }
 0x999   : > { %v1668_v10 = vsel %vm1667_vm11, %v1665_v9, 0.0 }
 0x99a   : > { %1669 = vadd.xlane.f32.xlu2 %v1668_v10 }
 0xa0d   : > { %v1670_v11 = vpop.xlane.xlu2 %1669 }
 0xa0e   : > { %v1671_v7 = vadd.f32 1e-16, %v1670_v11 }
 0xa10   : > { %2149 = vrsqrt.f32 %v1671_v7  ;;  %vm1678_vm12 = vweird.f32 %v1671_v7 }
 0xa16   : > { %v2150_v12 = vpop.eup %2149 }
 0xa17   : > { %v1673_v13 = vmul.f32 %v2150_v12, %v1671_v7  ;;  %vm1679_vm2 = vweird.f32 %v2150_v12 }
 0xa18   : > { %vm1680_vm13 = vmor %vm1678_vm12, %vm1679_vm2 }
 0xa19   : > { %v1674_v14 = vmul.f32 %v2150_v12, %v1673_v13 }
 0xa1b   : > { %v1675_v15 = vmul.f32 0.5, %v1674_v14 }
 0xa1d   : > { %v1676_v16 = vsub.f32 1.5, %v1675_v15 }
 0xa1f   : > { %v1677_v17 = vmul.f32 %v2150_v12, %v1676_v16 }
 0xa21   : > { %v1681_v18 = vsel %vm1680_vm13, %v2150_v12, %v1677_v17 }
 0xa22   : > { %v1683_v19 = vrot.slane %v1681_v18, 1  ;;  %v1686_v20 = vmul.f32 %v1681_v18, %v1652_v3 }
 0xa24   : > { %v1687_v37 = vmul.f32 %v1683_v19, %v1659_v5 }
 0xa26   : > { %v1690_v21 = vrot.slane %v1687_v37, 7 }
 0xa28   : > { %v1691_v22 = vsel %vm1664_vm10, %v1690_v21, %v1686_v20 }
 0xa29   : > { %1693 = vst.msk [vmem:[#allocation3] sm:$0x3] %vm1667_vm11, %v1691_v22 }
 0xa2a PF: > { %s2648_s24 = sld [smem:[#allocation7_spill]]  ;;  %s2209_s29 = smov [#allocation3]  }
 0xa2b   : > { %s2650_s30 = sld [smem:[#allocation20_spill]]  ;;  %s1702_s26 = sshll.u32 %s2209_s29, 4  ;;  %s1703_s26 = int_to_ptr.vmem [resolvable:$true] %s1702_s26 }
 0xa30   : > { %s2649_s21 = sadd.s32 4294967295, %s2648_s24  }
 0xa31   : > { %p2085_p7 = scmp.eq.s32.totalorder %s2649_s21, 1  ;;  %s1704_s4 = sshll.u32 %s2650_s30, 4  ;;  %s1705_s4 = int_to_ptr.hbm [resolvable:$true] %s1704_s4 }
 0xa33   : > { %2082 = dma.vmem_to_hbm [thread:$0]  (%p2085_p7), %s1703_s26, 32, %s1705_s4, [#allocation4]  }
 0xa34   : > { %2192 = dma.done.wait (%p2085_p7), [#allocation4], 32  }
 0xa35   : > { %2194 = vsyncadd (%p2085_p7), [#allocation4], 4294967264 }
 0xa36 PF: > { %s2651_s3 = sld [smem:[#allocation7_spill]] }
 0xa37   : > { %s2652_s2 = sld [smem:[#allocation6_spill]] }
 0xa38   : > { %s2653_s25 = sld [smem:[#allocation8_spill]] }
 0xa3c   : > { %s32_s26 = sadd.s32 1, %s2651_s3  }
 0xa3d   : > { %p29_p8 = scmp.ge.s32.totalorder %s32_s26, 4  }
 0xa3f   :  { %31 = sbr.rel (!%p29_p8) target bundleno = 15 (0xf), region = 164 }
 0xa44   :  { %1718 = vsyncpa [#allocation4], 1 }
 0xa45   :  { %1720 = vsyncpa [#allocation4 + $0x1], 1 }

</bundles_post_ra>
